<compile_context>
chip_gen: v5e
topology: v5e:2x2
jax: 0.10.0
libtpu: 0.0.40
codegen_flags: <defaults>
</compile_context>

<pallas_src>
import numpy as np
import jax
import jax.numpy as jnp
from jax.experimental import pallas as pl
from jax.experimental.pallas import tpu as pltpu

_LANES = 128   # lane-dense padding width for the 2-wide classification heads


# ----------------------------------------------------------------------------
# helpers
# ----------------------------------------------------------------------------
def full_spec(shape):
    nd = len(shape)
    return pl.BlockSpec(shape, lambda *args, _nd=nd: (0,) * _nd)


_ARB = pltpu.CompilerParams(dimension_semantics=("arbitrary",))
# TODO(synk): for realistic LPKT sizes (B~64, L~500, n_q~100+, d_k=128) switch the
# two recurrent kernels to a T-tiled grid with VMEM-carried state (bounded unroll,
# explicit vmem_limit_bytes) and add a leading "parallel" batch axis so v7x's
# second TensorCore gets work; at the toy config everything fits in a few KiB.


# ----------------------------------------------------------------------------
# Pallas kernel 1: fused bidirectional LSTM (single grid step).
# Input projection for both directions hoisted into one matmul; only the
# recurrent h @ whh dot stays on the serial chain; encoder output = fwd + bwd
# written back with one full-block store.
# ----------------------------------------------------------------------------
def make_bilstm_kernel(T, B, H):
    def kernel(x_ref, wih_ref, whhf_ref, whhb_ref, b_ref, enc_ref):
        I = x_ref.shape[-1]
        # hoisted input projection for BOTH directions: (T*B, I) @ (I, 8H)
        gx = (jnp.dot(x_ref[...].reshape(T * B, I), wih_ref[...],
                      preferred_element_type=jnp.float32)
              + b_ref[...]).reshape(T, B, 8 * H)
        whh_f = whhf_ref[...]
        whh_b = whhb_ref[...]

        def cell(gates_x_t, h, c, whh):
            g = gates_x_t + jnp.dot(h, whh, preferred_element_type=jnp.float32)
            sg = jax.nn.sigmoid(g[:, :3 * H])            # gates [i, f, o] contiguous
            gg = jnp.tanh(g[:, 3 * H:])                  # gate  g
            c_new = sg[:, H:2 * H] * c + sg[:, :H] * gg
            h_new = sg[:, 2 * H:3 * H] * jnp.tanh(c_new)
            return h_new, c_new

        zeros = jnp.zeros((B, H), jnp.float32)
        hf, cf, hb, cb = zeros, zeros, zeros, zeros
        hf_seq, hb_seq = [], []
        for s in range(T):                                # static unroll (toy T)
            hf, cf = cell(gx[s, :, :4 * H], hf, cf, whh_f)
            hb, cb = cell(gx[T - 1 - s, :, 4 * H:], hb, cb, whh_b)
            hf_seq.append(hf)
            hb_seq.append(hb)
        # enc[t] = h_fwd(t) + h_bwd(original position t) ; single full-block store
        enc_ref[...] = jnp.stack(
            [hf_seq[t] + hb_seq[T - 1 - t] for t in range(T)], axis=0)
    return kernel


def bilstm_encode(x_btf, p):
    """x_btf: (B, T, 2*d_k) -> enc (B, T, 2*d_k) = fwd_h + bwd_h (shared encoder)."""
    B, T, I = x_btf.shape
    H = p['lstm_whh_f_T'].shape[0]
    x_tm = jnp.transpose(x_btf, (1, 0, 2)).astype(jnp.float32)           # (T, B, I)
    wih = jnp.concatenate([p['lstm_wih_f_T'], p['lstm_wih_b_T']], axis=1)  # (I, 8H)
    bias = jnp.concatenate([p['lstm_b_f'], p['lstm_b_b']])[None, :]        # (1, 8H)

    enc_tm = pl.pallas_call(
        make_bilstm_kernel(T, B, H),
        out_shape=jax.ShapeDtypeStruct((T, B, H), jnp.float32),
        grid=(1,),
        in_specs=[full_spec((T, B, I)), full_spec((I, 8 * H)),
                  full_spec((H, 4 * H)), full_spec((H, 4 * H)),
                  full_spec((1, 8 * H))],
        out_specs=full_spec((T, B, H)),
        compiler_params=_ARB,
    )(x_tm, wih.astype(jnp.float32),
      p['lstm_whh_f_T'].astype(jnp.float32), p['lstm_whh_b_T'].astype(jnp.float32),
      bias.astype(jnp.float32))
    return jnp.transpose(enc_tm, (1, 0, 2))                              # (B, T, 2*d_k)


# ----------------------------------------------------------------------------
# Pallas kernel 2: fused attention discriminator head
#   alpha = sigmoid(attn3(tanh(repeat_interleave(attn1(q),2) + [attn2(enc)|attn2(k)])))
# repeat_interleave is folded into the attn1 weight; enc and k are stacked on M
# so attn2 is a single matmul; attn3 is padded to 128 output lanes.
# ----------------------------------------------------------------------------
def _disc_attn_kernel(q_ref, ek_ref, w1r_ref, b1r_ref, w2_ref, b2_ref,
                      w3_ref, b3_ref, alpha_ref):
    M = q_ref.shape[0]
    qr = (jnp.dot(q_ref[...], w1r_ref[...], preferred_element_type=jnp.float32)
          + b1r_ref[...])                                                # (M, 2*d_k)
    y = (jnp.dot(ek_ref[...], w2_ref[...], preferred_element_type=jnp.float32)
         + b2_ref[...])                                                  # (2M, d_k)
    kcat = jnp.concatenate([y[:M], y[M:]], axis=-1)                      # (M, 2*d_k)
    s = jnp.tanh(qr + kcat)
    alpha_ref[...] = jax.nn.sigmoid(
        jnp.dot(s, w3_ref[...], preferred_element_type=jnp.float32) + b3_ref[...])


def target_exer_discriminator(p, q, k, enc, mask, key, cfg):
    d_k = cfg['d_k']
    B, L, _ = k.shape
    M = B * L
    q2 = jnp.broadcast_to(q[:, None, :], (B, L, d_k)).reshape(M, d_k)
    ek = jnp.concatenate([enc.reshape(M, 2 * d_k), k.reshape(M, 2 * d_k)], axis=0)

    # fold torch.repeat_interleave(q_, 2, dim=2) into attn1:  q_rep = q_lin @ R
    R = np.zeros((d_k, 2 * d_k), np.float32)
    R[np.arange(d_k), 2 * np.arange(d_k)] = 1.0
    R[np.arange(d_k), 2 * np.arange(d_k) + 1] = 1.0
    R = jnp.asarray(R)
    w1r = (jnp.transpose(p['attn1_w']) @ R).astype(jnp.float32)          # (d_k, 2*d_k)
    b1r = (p['attn1_b'] @ R)[None, :].astype(jnp.float32)

    # lane-dense head: pad the 2-wide attn3 output to 128 lanes, slice outside
    w3p = jnp.zeros((2 * d_k, _LANES), jnp.float32).at[:, :2].set(
        jnp.transpose(p['attn3_w']).astype(jnp.float32))
    b3p = jnp.zeros((1, _LANES), jnp.float32).at[0, :2].set(
        p['attn3_b'].astype(jnp.float32))

    alpha_pad = pl.pallas_call(
        _disc_attn_kernel,
        out_shape=jax.ShapeDtypeStruct((M, _LANES), jnp.float32),
        grid=(1,),
        in_specs=[full_spec((M, d_k)), full_spec((2 * M, 2 * d_k)),
                  full_spec((d_k, 2 * d_k)), full_spec((1, 2 * d_k)),
                  full_spec((2 * d_k, d_k)), full_spec((1, d_k)),
                  full_spec((2 * d_k, _LANES)), full_spec((1, _LANES))],
        out_specs=full_spec((M, _LANES)),
        compiler_params=_ARB,
    )(q2.astype(jnp.float32), ek.astype(jnp.float32), w1r, b1r,
      jnp.transpose(p['attn2_w']).astype(jnp.float32),
      p['attn2_b'][None, :].astype(jnp.float32), w3p, b3p)
    alpha = alpha_pad[:, :2].reshape(B, L, 2)

    gum = gumbel_softmax_hard(alpha, key, tau=100.0)
    mask2 = jnp.broadcast_to(mask[:, :, None], (B, L, 2))
    gum = jnp.where(mask2 == 0, -jnp.inf, gum)
    return gum[:, :, 1], jnp.asarray(0.0, jnp.float32)


# ----------------------------------------------------------------------------
# Pallas kernel 3: fully fused VAE branch
#   fc1 -> relu -> [fc2|fc3] -> reparam -> fc4 -> relu -> fc5 -> (loss reduce)
#   -> Conv2d(L,L,(1,2)) as one batched matmul -> relu -> mlp head -> sigmoid
# Losses are reduced in-kernel; the mlp head is padded to 128 output lanes.
# ----------------------------------------------------------------------------
def make_vae_kernel(B, L, D2, d_k):
    M = B * L

    def kernel(enc_ref, eps_ref, mask_ref, w1_ref, b1_ref, w23_ref, b23_ref,
               w4_ref, b4_ref, w5_ref, b5_ref, wconv_ref, bconv_ref, wmlp_ref,
               loss_ref, score_ref):
        enc3 = enc_ref[...]                                              # (B, L, D2)
        enc2 = enc3.reshape(M, D2)
        h1 = jax.nn.relu(jnp.dot(enc2, w1_ref[...],
                                 preferred_element_type=jnp.float32) + b1_ref[...])
        ml = jnp.dot(h1, w23_ref[...], preferred_element_type=jnp.float32) + b23_ref[...]
        mu = ml[:, :d_k]
        log_var = ml[:, d_k:]
        z = mu + eps_ref[...] * jnp.exp(log_var * 0.5)
        h4 = jax.nn.relu(jnp.dot(z, w4_ref[...],
                                 preferred_element_type=jnp.float32) + b4_ref[...])
        xr = jax.nn.sigmoid(jnp.dot(h4, w5_ref[...],
                                    preferred_element_type=jnp.float32) + b5_ref[...])

        # masked MSE + KL, reduced in-kernel (no HBM round-trip of xr/mu/log_var)
        d = (xr - enc2) * mask_ref[...]
        rec = jnp.sum(jnp.sum(d * d, axis=1, keepdims=True), axis=0, keepdims=True)
        klm = 1.0 + log_var - mu * mu - jnp.exp(log_var)
        kl = -0.5 * jnp.sum(jnp.sum(klm, axis=1, keepdims=True), axis=0, keepdims=True)
        loss_ref[...] = jnp.broadcast_to(rec + kl, (1, _LANES))

        # Conv2d(L, L, (1, 2)) over the channel(=seq) axis: both taps stacked on
        # the contraction axis, one batched matmul (no in-kernel transposes).
        xcat = jnp.concatenate([xr.reshape(B, L, D2), enc3], axis=1)     # (B, 2L, D2)
        conv = jnp.einsum('bol,bld->bod', wconv_ref[...], xcat,
                          preferred_element_type=jnp.float32)            # (B, L, D2)
        conv2 = jax.nn.relu(conv.reshape(M, D2) + bconv_ref[...])
        score_ref[...] = jax.nn.sigmoid(
            jnp.dot(conv2, wmlp_ref[...], preferred_element_type=jnp.float32))
    return kernel


def seq_level_vae(p, enc, mask, eps_key, gum_key, cfg):
    d_k = cfg['d_k']
    B, L, D2 = enc.shape                      # D2 = 2*d_k
    M = B * L
    eps = jax.random.normal(eps_key, (M, d_k), jnp.float32)
    mask_m = mask.reshape(M, 1).astype(jnp.float32)

    w23 = jnp.concatenate([jnp.transpose(p['vae_fc2_w']),
                           jnp.transpose(p['vae_fc3_w'])], axis=1)        # (d_k, 2*d_k)
    b23 = jnp.concatenate([p['vae_fc2_b'], p['vae_fc3_b']])[None, :]
    # Conv taps [w0 | w1] stacked on K, pre-broadcast over the batch.
    wconv = jnp.broadcast_to(
        jnp.concatenate([p['conv_w'][:, :, 0, 0], p['conv_w'][:, :, 0, 1]],
                        axis=1)[None], (B, L, 2 * L)).astype(jnp.float32)
    bconv_m = jnp.broadcast_to(p['conv_b'][None, :, None],
                               (B, L, 1)).reshape(M, 1).astype(jnp.float32)
    wmlp = jnp.zeros((D2, _LANES), jnp.float32).at[:, :2].set(
        jnp.transpose(p['mlp_w']).astype(jnp.float32))

    loss_pad, score_pad = pl.pallas_call(
        make_vae_kernel(B, L, D2, d_k),
        out_shape=(jax.ShapeDtypeStruct((1, _LANES), jnp.float32),
                   jax.ShapeDtypeStruct((M, _LANES), jnp.float32)),
        grid=(1,),
        in_specs=[full_spec((B, L, D2)), full_spec((M, d_k)), full_spec((M, 1)),
                  full_spec((D2, d_k)), full_spec((1, d_k)),
                  full_spec((d_k, 2 * d_k)), full_spec((1, 2 * d_k)),
                  full_spec((d_k, d_k)), full_spec((1, d_k)),
                  full_spec((d_k, D2)), full_spec((1, D2)),
                  full_spec((B, L, 2 * L)), full_spec((M, 1)),
                  full_spec((D2, _LANES))],
        out_specs=[full_spec((1, _LANES)), full_spec((M, _LANES))],
        compiler_params=_ARB,
    )(enc.astype(jnp.float32), eps, mask_m,
      jnp.transpose(p['vae_fc1_w']).astype(jnp.float32),
      p['vae_fc1_b'][None, :].astype(jnp.float32),
      w23.astype(jnp.float32), b23.astype(jnp.float32),
      jnp.transpose(p['vae_fc4_w']).astype(jnp.float32),
      p['vae_fc4_b'][None, :].astype(jnp.float32),
      jnp.transpose(p['vae_fc5_w']).astype(jnp.float32),
      p['vae_fc5_b'][None, :].astype(jnp.float32),
      wconv, bconv_m, wmlp)

    ew_loss = loss_pad[0, 0]
    score = score_pad[:, :2].reshape(B, L, 2)
    mask2 = jnp.broadcast_to(mask[:, :, None], (B, L, 2))
    score = score * mask2
    gum = gumbel_softmax_hard(score, gum_key, tau=100.0)
    gum = jnp.where(mask2 == 0, -jnp.inf, gum)
    return ew_loss, gum


# ----------------------------------------------------------------------------
# Pallas kernel 4: the LPKT recurrent knowledge-tracing loop.
# linear_1 and every time-known matmul contribution (it/learning rows of
# linear_2/3, it row of linear_4, exercise rows of linear_5, all biases) are
# hoisted into two well-shaped matmuls before the loop; the loop only does the
# carry-dependent dots.  Predictions are accumulated in registers and written
# once as a lane-major (B, T) block.
# ----------------------------------------------------------------------------
def make_kt_kernel(T, B, n_q, d_k, d_e, n_steps):
    def kernel(qe_ref, it_ref, lin1_ref, exer_ref, h0_ref,
               w1_ref, b1_ref, wh_ref, bh_ref, wlh_ref,
               w4lg_ref, w4h_ref, w5h_ref, pred_ref):
        # ---- hoisted time-invariant matmuls ------------------------------
        lin1_in = lin1_ref[...].reshape(T * B, lin1_ref.shape[-1])
        learning = (jnp.dot(lin1_in, w1_ref[...],
                            preferred_element_type=jnp.float32) + b1_ref[...])
        it_flat = it_ref[...].reshape(T * B, d_k)
        exer_flat = exer_ref[...].reshape(T * B, d_e)
        hoist_in = jnp.concatenate([it_flat, learning, exer_flat], axis=1)
        hoisted = (jnp.dot(hoist_in, wh_ref[...],
                           preferred_element_type=jnp.float32) + bh_ref[...])
        gl_x = hoisted[:, :2 * d_k].reshape(T, B, 2 * d_k)        # linear_2/3 (x part)
        z_it = hoisted[:, 2 * d_k:3 * d_k].reshape(T, B, d_k)     # linear_4 (it part)
        y_ex = hoisted[:, 3 * d_k:].reshape(T, B, d_k)            # linear_5 (exer part)
        learn3 = learning.reshape(T, B, d_k)
        qe = qe_ref[...]
        wlh = wlh_ref[...]
        w4lg = w4lg_ref[...]
        w4h = w4h_ref[...]
        w5h = w5h_ref[...]
        h0 = h0_ref[...]

        h_pre = jnp.broadcast_to(h0[None], (B, n_q, d_k))
        ht_pre = jnp.dot(qe[0], h0, preferred_element_type=jnp.float32)   # q_e . h_pre
        l_pre = jnp.zeros((B, d_k), jnp.float32)

        pred_cols = [jnp.zeros((B, 1), jnp.float32)]
        for t in range(n_steps):                                  # static unroll (toy T)
            gl = gl_x[t] + jnp.dot(jnp.concatenate([l_pre, ht_pre], axis=1), wlh,
                                   preferred_element_type=jnp.float32)
            IG = jnp.tanh(gl[:, :d_k])
            Gamma_l = jax.nn.sigmoid(gl[:, d_k:])
            LG = Gamma_l * (IG + 1.0) * 0.5                       # (B, d_k)
            z = z_it[t] + jnp.dot(LG, w4lg, preferred_element_type=jnp.float32)
            hp = jnp.dot(h_pre.reshape(B * n_q, d_k), w4h,
                         preferred_element_type=jnp.float32).reshape(B, n_q, d_k)
            gamma_f = jax.nn.sigmoid(hp + z[:, None, :])
            h = qe[t][:, :, None] * LG[:, None, :] + gamma_f * h_pre
            h_tilde = jnp.sum(qe[t + 1][:, :, None] * h, axis=1)  # (B, d_k)
            y = jax.nn.sigmoid(
                y_ex[t + 1] + jnp.dot(h_tilde, w5h, preferred_element_type=jnp.float32))
            pred_cols.append(jnp.sum(y, axis=1, keepdims=True) * (1.0 / d_k))
            h_pre, l_pre, ht_pre = h, learn3[t], h_tilde
        for _ in range(T - 1 - n_steps):
            pred_cols.append(jnp.zeros((B, 1), jnp.float32))
        pred_ref[...] = jnp.concatenate(pred_cols, axis=1)        # (B, T), single store
    return kernel


def recurrent_kt(qe_tm, it_tm, lin1_tm, exer_tm, h0, p, cfg, n_steps):
    T, B, n_q = qe_tm.shape
    d_k, d_e = cfg['d_k'], cfg['d_e']
    d_lin1 = lin1_tm.shape[-1]

    w23 = jnp.concatenate([jnp.transpose(p['linear_2_w']),
                           jnp.transpose(p['linear_3_w'])], axis=1)       # (4dk, 2dk)
    w4t = jnp.transpose(p['linear_4_w'])                                  # (3dk, dk)
    w5t = jnp.transpose(p['linear_5_w'])                                  # (de+dk, dk)

    # hoisted weight block: rows [it | learning | exer], cols [gl_x | z_it | y_exer]
    Wh = jnp.zeros((2 * d_k + d_e, 4 * d_k), jnp.float32)
    Wh = Wh.at[0:d_k, 0:2 * d_k].set(w23[d_k:2 * d_k])                    # it -> gl
    Wh = Wh.at[d_k:2 * d_k, 0:2 * d_k].set(w23[2 * d_k:3 * d_k])          # learning -> gl
    Wh = Wh.at[0:d_k, 2 * d_k:3 * d_k].set(w4t[2 * d_k:3 * d_k])          # it -> z
    Wh = Wh.at[2 * d_k:2 * d_k + d_e, 3 * d_k:4 * d_k].set(w5t[0:d_e])    # exer -> y
    bh = jnp.concatenate([p['linear_2_b'], p['linear_3_b'],
                          p['linear_4_b'], p['linear_5_b']])[None, :]     # (1, 4dk)

    wlh = jnp.concatenate([w23[0:d_k], w23[3 * d_k:4 * d_k]], axis=0)     # [l_pre|ht_pre]
    w4lg = w4t[d_k:2 * d_k]
    w4h = w4t[0:d_k]
    w5h = w5t[d_e:]

    return pl.pallas_call(
        make_kt_kernel(T, B, n_q, d_k, d_e, n_steps),
        out_shape=jax.ShapeDtypeStruct((B, T), jnp.float32),
        grid=(1,),
        in_specs=[full_spec((T, B, n_q)), full_spec((T, B, d_k)),
                  full_spec((T, B, d_lin1)), full_spec((T, B, d_e)),
                  full_spec((n_q, d_k)),
                  full_spec((d_lin1, d_k)), full_spec((1, d_k)),
                  full_spec((2 * d_k + d_e, 4 * d_k)), full_spec((1, 4 * d_k)),
                  full_spec((2 * d_k, 2 * d_k)),
                  full_spec((d_k, d_k)), full_spec((d_k, d_k)), full_spec((d_k, d_k))],
        out_specs=full_spec((B, T)),
        compiler_params=_ARB,
    )(qe_tm.astype(jnp.float32), it_tm.astype(jnp.float32),
      lin1_tm.astype(jnp.float32), exer_tm.astype(jnp.float32),
      h0.astype(jnp.float32),
      jnp.transpose(p['linear_1_w']).astype(jnp.float32),
      p['linear_1_b'][None, :].astype(jnp.float32),
      Wh, bh.astype(jnp.float32), wlh.astype(jnp.float32),
      w4lg.astype(jnp.float32), w4h.astype(jnp.float32), w5h.astype(jnp.float32))


# ----------------------------------------------------------------------------
# Plain-JAX glue reproducing the rest of the forward pass
# ----------------------------------------------------------------------------
def gumbel_softmax_hard(logits, key, tau):
    u = jax.random.uniform(key, logits.shape, jnp.float32, 1e-6, 1.0 - 1e-6)
    g = -jnp.log(-jnp.log(u))
    y_soft = jax.nn.softmax((logits + g) / tau, axis=-1)
    idx = jnp.argmax(y_soft, axis=-1)
    return jax.nn.one_hot(idx, logits.shape[-1], dtype=jnp.float32)


def lpkt_forward(p, data, cfg, key):
    d_k, d_a, d_e = cfg['d_k'], cfg['d_a'], cfg['d_e']
    n_q = cfg['skill_num']
    exercise, skill, correct = data['problem'], data['skill'], data['correct']
    answertime, interval = data['at'], data['it']
    seqs_length = data['seqs_length']                      # host numpy
    B, L = exercise.shape
    k_gum1, k_gum2, k_eps = jax.random.split(key, 3)

    stu_emb = p['student_emb'][data['user_id']]                            # (B, d_k)
    exer_emb = p['e_embed'][exercise]                                      # (B, L, d_e)
    mask_labels = correct * (correct > -1).astype(correct.dtype)
    knowledge_emb = p['knowledge_emb'][skill + n_q * mask_labels]          # (B, L, d_k)
    mask = (exercise != 0).astype(jnp.float32)
    k_ = jnp.concatenate([exer_emb, knowledge_emb], axis=2)                # (B, L, 2*d_k)

    # BiLSTM encoder computed ONCE and shared by both branches (eval mode).
    enc = bilstm_encode(k_ * mask[:, :, None], p)                          # (B, L, 2*d_k)

    stu_sig, cl_loss = target_exer_discriminator(p, stu_emb, k_, enc, mask, k_gum1, cfg)
    re_loss, seq_score = seq_level_vae(p, enc, mask, k_eps, k_gum2, cfg)
    seq_sig = seq_score[:, :, 1]

    deno = 1.0 - seq_sig * stu_sig
    deno = jnp.where(jnp.isneginf(deno), 0.0, deno)
    deno3 = jnp.broadcast_to(deno[:, :, None], (B, L, d_k))

    at_emb = p['at_embed'][answertime] * deno3
    it_emb = p['it_embed'][interval] * deno3
    e_emb = p['e_embed'][exercise] * deno3
    a_data = jnp.broadcast_to(correct[:, :, None].astype(jnp.float32), (B, L, d_a))
    lin1_in = jnp.concatenate([e_emb, at_emb, a_data], axis=2)             # (B, L, de+dk+da)

    qe_all = p['Q'][exercise]                                              # (B, L, n_q)
    lens = np.asarray(seqs_length)
    n_steps = int(lens.max()) - 1

    pred = recurrent_kt(jnp.transpose(qe_all, (1, 0, 2)),
                        jnp.transpose(it_emb, (1, 0, 2)),
                        jnp.transpose(lin1_in, (1, 0, 2)),
                        jnp.transpose(e_emb, (1, 0, 2)),
                        p['h0'], p, cfg, n_steps)                          # (B, L)

    # pack_padded_sequence(pred[:, 1:], lengths - 1, batch_first=True).data
    t_idx, b_idx = np.meshgrid(np.arange(n_steps), np.arange(B), indexing='ij')
    keep = t_idx < (lens[b_idx] - 1)
    rows = jnp.asarray(b_idx[keep])
    cols = jnp.asarray(t_idx[keep] + 1)
    predictions = pred[rows, cols]
    labels = correct[rows, cols].astype(jnp.float32)
    return {'predictions': predictions, 'labels': labels,
            'clloss': cl_loss, 'reloss': re_loss}


# ----------------------------------------------------------------------------
# Deterministic parameter / input construction
# ----------------------------------------------------------------------------
def build_params(key, cfg):
    d_k, d_e = cfg['d_k'], cfg['d_e']
    L, n_q, n_ex = cfg['max_length'], cfg['skill_num'], cfg['problem_num']
    H = 2 * d_k
    keys = iter(jax.random.split(key, 64))
    nk = lambda: next(keys)

    def xavier(shape):
        a = float(np.sqrt(6.0 / (shape[0] + shape[1])))
        return jax.random.uniform(nk(), shape, jnp.float32, -a, a)

    def unif(shape, s=0.1):
        return jax.random.uniform(nk(), shape, jnp.float32, -s, s)

    p = {}
    p['at_embed'] = xavier((cfg['n_at'] + 10, d_k))
    p['it_embed'] = xavier((cfg['n_it'] + 10, d_k))
    p['e_embed'] = xavier((n_ex + 10, d_e))
    p['student_emb'] = jax.random.normal(nk(), (cfg['student_num'] + 2, d_k), jnp.float32)
    ke = jax.random.normal(nk(), (2 * n_q + 8, d_k), jnp.float32)
    p['knowledge_emb'] = ke.at[0].set(0.0)                    # padding_idx = 0
    p['linear_1_w'] = xavier((d_k, cfg['d_a'] + d_e + d_k)); p['linear_1_b'] = unif((d_k,))
    p['linear_2_w'] = xavier((d_k, 4 * d_k)); p['linear_2_b'] = unif((d_k,))
    p['linear_3_w'] = xavier((d_k, 4 * d_k)); p['linear_3_b'] = unif((d_k,))
    p['linear_4_w'] = xavier((d_k, 3 * d_k)); p['linear_4_b'] = unif((d_k,))
    p['linear_5_w'] = xavier((d_k, d_e + d_k)); p['linear_5_b'] = unif((d_k,))
    p['attn1_w'] = xavier((d_k, d_k)); p['attn1_b'] = unif((d_k,))
    p['attn2_w'] = xavier((d_k, 2 * d_k)); p['attn2_b'] = unif((d_k,))
    p['attn3_w'] = xavier((2, 2 * d_k)); p['attn3_b'] = unif((2,))
    p['mlp_w'] = xavier((2, H))                               # seq_level_mlp (no bias)
    p['conv_w'] = unif((L, L, 1, 2)); p['conv_b'] = unif((L,))
    # VAE(input=2*d_k, h=d_k, z=d_k)
    p['vae_fc1_w'] = xavier((d_k, 2 * d_k)); p['vae_fc1_b'] = unif((d_k,))
    p['vae_fc2_w'] = xavier((d_k, d_k)); p['vae_fc2_b'] = unif((d_k,))
    p['vae_fc3_w'] = xavier((d_k, d_k)); p['vae_fc3_b'] = unif((d_k,))
    p['vae_fc4_w'] = xavier((d_k, d_k)); p['vae_fc4_b'] = unif((d_k,))
    p['vae_fc5_w'] = xavier((2 * d_k, d_k)); p['vae_fc5_b'] = unif((2 * d_k,))
    # bidirectional LSTM(input=2*d_k, hidden=2*d_k); stored transposed, gate
    # layout [i, f, o, g] so one sigmoid covers the first 3H columns.
    for d in ('f', 'b'):
        p[f'lstm_wih_{d}_T'] = unif((H, 4 * H))
        p[f'lstm_whh_{d}_T'] = unif((H, 4 * H))
        p[f'lstm_b_{d}'] = unif((4 * H,))
    # synthetic deterministic Q-matrix
    # TODO(synk): real model loads data/<dataset>/Q_matrix.txt
    p['Q'] = (jax.random.uniform(nk(), (n_ex + 10, n_q)) < 0.4).astype(jnp.float32)
    # h0 (in torch: xavier_uniform on zeros(n_q, d_k) each forward)
    p['h0'] = xavier((n_q, d_k))
    return p


def build_inputs(key, cfg, batch):
    L = cfg['max_length']
    seqs_length = np.array([8, 7, 5, 3], dtype=np.int32)[:batch]
    ks = jax.random.split(key, 6)
    pos = jnp.arange(L)[None, :]
    valid = pos < jnp.asarray(seqs_length)[:, None]
    problem = jnp.where(valid, jax.random.randint(ks[0], (batch, L), 1, cfg['problem_num'] + 1), 0)
    skill = jnp.where(valid, jax.random.randint(ks[1], (batch, L), 1, cfg['skill_num'] + 1), 0)
    correct = jnp.where(valid, jax.random.randint(ks[2], (batch, L), 0, 2), -1)
    at = jnp.where(valid, jax.random.randint(ks[3], (batch, L), 0, cfg['n_at']), 0)
    it = jnp.where(valid, jax.random.randint(ks[4], (batch, L), 0, cfg['n_it']), 0)
    user_id = jax.random.randint(ks[5], (batch,), 0, cfg['student_num'])
    return dict(problem=problem.astype(jnp.int32), skill=skill.astype(jnp.int32),
                correct=correct.astype(jnp.int32), at=at.astype(jnp.int32),
                it=it.astype(jnp.int32), user_id=user_id.astype(jnp.int32),
                seqs_length=seqs_length)


if __name__ == "__main__":
    cfg = dict(d_k=16, d_a=16, d_e=16, skill_num=8, problem_num=12,
               n_at=6, n_it=6, student_num=10, max_length=8, dropout=0.2)
    root = jax.random.PRNGKey(0)
    kp, kd, kf = jax.random.split(root, 3)
    params = build_params(kp, cfg)
    data = build_inputs(kd, cfg, batch=4)
    out = lpkt_forward(params, data, cfg, kf)
    jax.block_until_ready((out['predictions'], out['labels'],
                           out['reloss'], out['clloss']))
    print("KERNEL_OK")
</pallas_src>

<mosaic_0001>
module attributes {stable_mosaic.version = 11 : i64} {
  func.func @kernel(%arg0: i32, %arg1: memref<8x4x32xf32, #tpu.memory_space<vmem>>, %arg2: memref<32x256xf32, #tpu.memory_space<vmem>>, %arg3: memref<32x128xf32, #tpu.memory_space<vmem>>, %arg4: memref<32x128xf32, #tpu.memory_space<vmem>>, %arg5: memref<1x256xf32, #tpu.memory_space<vmem>>, %arg6: memref<8x4x32xf32, #tpu.memory_space<vmem>>) attributes {dimension_semantics = [#tpu.dimension_semantics<arbitrary>], iteration_bounds = array<i64: 1>, scalar_prefetch = 0 : i64, scratch_operands = 0 : i64, tpu.core_type = #tpu.core_type<tc>, window_params = [{pipeline_mode = #tpu.pipeline_mode<synchronous>, transform_indices = @transform_0, window_bounds = array<i64: 8, 4, 32>}, {pipeline_mode = #tpu.pipeline_mode<synchronous>, transform_indices = @transform_1, window_bounds = array<i64: 32, 256>}, {pipeline_mode = #tpu.pipeline_mode<synchronous>, transform_indices = @transform_2, window_bounds = array<i64: 32, 128>}, {pipeline_mode = #tpu.pipeline_mode<synchronous>, transform_indices = @transform_3, window_bounds = array<i64: 32, 128>}, {pipeline_mode = #tpu.pipeline_mode<synchronous>, transform_indices = @transform_4, window_bounds = array<i64: 1, 256>}, {pipeline_mode = #tpu.pipeline_mode<synchronous>, transform_indices = @transform_5, window_bounds = array<i64: 8, 4, 32>}]} {
    %c0 = arith.constant 0 : index
    %c0_0 = arith.constant 0 : index
    %c0_1 = arith.constant 0 : index
    %0 = vector.load %arg1[%c0, %c0_0, %c0_1] : memref<8x4x32xf32, #tpu.memory_space<vmem>>, vector<8x4x32xf32>
    %1 = vector.shape_cast %0 : vector<8x4x32xf32> to vector<32x32xf32>
    %c0_2 = arith.constant 0 : index
    %c0_3 = arith.constant 0 : index
    %2 = vector.load %arg2[%c0_2, %c0_3] : memref<32x256xf32, #tpu.memory_space<vmem>>, vector<32x256xf32>
    %cst = arith.constant dense<0.000000e+00> : vector<32x256xf32>
    %3 = tpu.matmul %1, %2, %cst {dimension_numbers = #tpu.dot_dimension_numbers<[1], [0], [0], [1], [0, 0, 1, 1], [], []>} : vector<32x32xf32>, vector<32x256xf32>, vector<32x256xf32> -> vector<32x256xf32>
    %c0_4 = arith.constant 0 : index
    %c0_5 = arith.constant 0 : index
    %4 = vector.load %arg5[%c0_4, %c0_5] : memref<1x256xf32, #tpu.memory_space<vmem>>, vector<1x256xf32>
    %5 = vector.broadcast %4 : vector<1x256xf32> to vector<32x256xf32>
    %6 = arith.addf %3, %5 : vector<32x256xf32>
    %7 = vector.shape_cast %6 : vector<32x256xf32> to vector<8x4x256xf32>
    %c0_6 = arith.constant 0 : index
    %c0_7 = arith.constant 0 : index
    %8 = vector.load %arg3[%c0_6, %c0_7] : memref<32x128xf32, #tpu.memory_space<vmem>>, vector<32x128xf32>
    %c0_8 = arith.constant 0 : index
    %c0_9 = arith.constant 0 : index
    %9 = vector.load %arg4[%c0_8, %c0_9] : memref<32x128xf32, #tpu.memory_space<vmem>>, vector<32x128xf32>
    %cst_10 = arith.constant 0.000000e+00 : f32
    %10 = vector.broadcast %cst_10 : f32 to vector<4x32xf32>
    %11 = vector.extract_strided_slice %7 {offsets = [0, 0, 0], sizes = [1, 4, 128], strides = [1, 1, 1]} : vector<8x4x256xf32> to vector<1x4x128xf32>
    %12 = vector.shape_cast %11 : vector<1x4x128xf32> to vector<4x128xf32>
    %cst_11 = arith.constant dense<0.000000e+00> : vector<4x128xf32>
    %13 = tpu.matmul %10, %8, %cst_11 {dimension_numbers = #tpu.dot_dimension_numbers<[1], [0], [0], [1], [0, 0, 1, 1], [], []>} : vector<4x32xf32>, vector<32x128xf32>, vector<4x128xf32> -> vector<4x128xf32>
    %14 = arith.addf %12, %13 : vector<4x128xf32>
    %15 = vector.extract_strided_slice %14 {offsets = [0, 0], sizes = [4, 96], strides = [1, 1]} : vector<4x128xf32> to vector<4x96xf32>
    %16 = arith.negf %15 : vector<4x96xf32>
    %17 = math.exp %16 : vector<4x96xf32>
    %cst_12 = arith.constant 1.000000e+00 : f32
    %18 = vector.broadcast %cst_12 : f32 to vector<4x96xf32>
    %19 = arith.addf %18, %17 : vector<4x96xf32>
    %20 = arith.divf %18, %19 : vector<4x96xf32>
    %21 = vector.extract_strided_slice %14 {offsets = [0, 96], sizes = [4, 32], strides = [1, 1]} : vector<4x128xf32> to vector<4x32xf32>
    %22 = math.tanh %21 : vector<4x32xf32>
    %23 = vector.extract_strided_slice %20 {offsets = [0, 32], sizes = [4, 32], strides = [1, 1]} : vector<4x96xf32> to vector<4x32xf32>
    %24 = arith.mulf %23, %10 : vector<4x32xf32>
    %25 = vector.extract_strided_slice %20 {offsets = [0, 0], sizes = [4, 32], strides = [1, 1]} : vector<4x96xf32> to vector<4x32xf32>
    %26 = arith.mulf %25, %22 : vector<4x32xf32>
    %27 = arith.addf %24, %26 : vector<4x32xf32>
    %28 = vector.extract_strided_slice %20 {offsets = [0, 64], sizes = [4, 32], strides = [1, 1]} : vector<4x96xf32> to vector<4x32xf32>
    %29 = math.tanh %27 : vector<4x32xf32>
    %30 = arith.mulf %28, %29 : vector<4x32xf32>
    %31 = vector.extract_strided_slice %7 {offsets = [7, 0, 128], sizes = [1, 4, 128], strides = [1, 1, 1]} : vector<8x4x256xf32> to vector<1x4x128xf32>
    %32 = vector.shape_cast %31 : vector<1x4x128xf32> to vector<4x128xf32>
    %cst_13 = arith.constant dense<0.000000e+00> : vector<4x128xf32>
    %33 = tpu.matmul %10, %9, %cst_13 {dimension_numbers = #tpu.dot_dimension_numbers<[1], [0], [0], [1], [0, 0, 1, 1], [], []>} : vector<4x32xf32>, vector<32x128xf32>, vector<4x128xf32> -> vector<4x128xf32>
    %34 = arith.addf %32, %33 : vector<4x128xf32>
    %35 = vector.extract_strided_slice %34 {offsets = [0, 0], sizes = [4, 96], strides = [1, 1]} : vector<4x128xf32> to vector<4x96xf32>
    %36 = arith.negf %35 : vector<4x96xf32>
    %37 = math.exp %36 : vector<4x96xf32>
    %cst_14 = arith.constant 1.000000e+00 : f32
    %38 = vector.broadcast %cst_14 : f32 to vector<4x96xf32>
    %39 = arith.addf %38, %37 : vector<4x96xf32>
    %40 = arith.divf %38, %39 : vector<4x96xf32>
    %41 = vector.extract_strided_slice %34 {offsets = [0, 96], sizes = [4, 32], strides = [1, 1]} : vector<4x128xf32> to vector<4x32xf32>
    %42 = math.tanh %41 : vector<4x32xf32>
    %43 = vector.extract_strided_slice %40 {offsets = [0, 32], sizes = [4, 32], strides = [1, 1]} : vector<4x96xf32> to vector<4x32xf32>
    %44 = arith.mulf %43, %10 : vector<4x32xf32>
    %45 = vector.extract_strided_slice %40 {offsets = [0, 0], sizes = [4, 32], strides = [1, 1]} : vector<4x96xf32> to vector<4x32xf32>
    %46 = arith.mulf %45, %42 : vector<4x32xf32>
    %47 = arith.addf %44, %46 : vector<4x32xf32>
    %48 = vector.extract_strided_slice %40 {offsets = [0, 64], sizes = [4, 32], strides = [1, 1]} : vector<4x96xf32> to vector<4x32xf32>
    %49 = math.tanh %47 : vector<4x32xf32>
    %50 = arith.mulf %48, %49 : vector<4x32xf32>
    %51 = vector.extract_strided_slice %7 {offsets = [1, 0, 0], sizes = [1, 4, 128], strides = [1, 1, 1]} : vector<8x4x256xf32> to vector<1x4x128xf32>
    %52 = vector.shape_cast %51 : vector<1x4x128xf32> to vector<4x128xf32>
    %cst_15 = arith.constant dense<0.000000e+00> : vector<4x128xf32>
    %53 = tpu.matmul %30, %8, %cst_15 {dimension_numbers = #tpu.dot_dimension_numbers<[1], [0], [0], [1], [0, 0, 1, 1], [], []>} : vector<4x32xf32>, vector<32x128xf32>, vector<4x128xf32> -> vector<4x128xf32>
    %54 = arith.addf %52, %53 : vector<4x128xf32>
    %55 = vector.extract_strided_slice %54 {offsets = [0, 0], sizes = [4, 96], strides = [1, 1]} : vector<4x128xf32> to vector<4x96xf32>
    %56 = arith.negf %55 : vector<4x96xf32>
    %57 = math.exp %56 : vector<4x96xf32>
    %cst_16 = arith.constant 1.000000e+00 : f32
    %58 = vector.broadcast %cst_16 : f32 to vector<4x96xf32>
    %59 = arith.addf %58, %57 : vector<4x96xf32>
    %60 = arith.divf %58, %59 : vector<4x96xf32>
    %61 = vector.extract_strided_slice %54 {offsets = [0, 96], sizes = [4, 32], strides = [1, 1]} : vector<4x128xf32> to vector<4x32xf32>
    %62 = math.tanh %61 : vector<4x32xf32>
    %63 = vector.extract_strided_slice %60 {offsets = [0, 32], sizes = [4, 32], strides = [1, 1]} : vector<4x96xf32> to vector<4x32xf32>
    %64 = arith.mulf %63, %27 : vector<4x32xf32>
    %65 = vector.extract_strided_slice %60 {offsets = [0, 0], sizes = [4, 32], strides = [1, 1]} : vector<4x96xf32> to vector<4x32xf32>
    %66 = arith.mulf %65, %62 : vector<4x32xf32>
    %67 = arith.addf %64, %66 : vector<4x32xf32>
    %68 = vector.extract_strided_slice %60 {offsets = [0, 64], sizes = [4, 32], strides = [1, 1]} : vector<4x96xf32> to vector<4x32xf32>
    %69 = math.tanh %67 : vector<4x32xf32>
    %70 = arith.mulf %68, %69 : vector<4x32xf32>
    %71 = vector.extract_strided_slice %7 {offsets = [6, 0, 128], sizes = [1, 4, 128], strides = [1, 1, 1]} : vector<8x4x256xf32> to vector<1x4x128xf32>
    %72 = vector.shape_cast %71 : vector<1x4x128xf32> to vector<4x128xf32>
    %cst_17 = arith.constant dense<0.000000e+00> : vector<4x128xf32>
    %73 = tpu.matmul %50, %9, %cst_17 {dimension_numbers = #tpu.dot_dimension_numbers<[1], [0], [0], [1], [0, 0, 1, 1], [], []>} : vector<4x32xf32>, vector<32x128xf32>, vector<4x128xf32> -> vector<4x128xf32>
    %74 = arith.addf %72, %73 : vector<4x128xf32>
    %75 = vector.extract_strided_slice %74 {offsets = [0, 0], sizes = [4, 96], strides = [1, 1]} : vector<4x128xf32> to vector<4x96xf32>
    %76 = arith.negf %75 : vector<4x96xf32>
    %77 = math.exp %76 : vector<4x96xf32>
    %cst_18 = arith.constant 1.000000e+00 : f32
    %78 = vector.broadcast %cst_18 : f32 to vector<4x96xf32>
    %79 = arith.addf %78, %77 : vector<4x96xf32>
    %80 = arith.divf %78, %79 : vector<4x96xf32>
    %81 = vector.extract_strided_slice %74 {offsets = [0, 96], sizes = [4, 32], strides = [1, 1]} : vector<4x128xf32> to vector<4x32xf32>
    %82 = math.tanh %81 : vector<4x32xf32>
    %83 = vector.extract_strided_slice %80 {offsets = [0, 32], sizes = [4, 32], strides = [1, 1]} : vector<4x96xf32> to vector<4x32xf32>
    %84 = arith.mulf %83, %47 : vector<4x32xf32>
    %85 = vector.extract_strided_slice %80 {offsets = [0, 0], sizes = [4, 32], strides = [1, 1]} : vector<4x96xf32> to vector<4x32xf32>
    %86 = arith.mulf %85, %82 : vector<4x32xf32>
    %87 = arith.addf %84, %86 : vector<4x32xf32>
    %88 = vector.extract_strided_slice %80 {offsets = [0, 64], sizes = [4, 32], strides = [1, 1]} : vector<4x96xf32> to vector<4x32xf32>
    %89 = math.tanh %87 : vector<4x32xf32>
    %90 = arith.mulf %88, %89 : vector<4x32xf32>
    %91 = vector.extract_strided_slice %7 {offsets = [2, 0, 0], sizes = [1, 4, 128], strides = [1, 1, 1]} : vector<8x4x256xf32> to vector<1x4x128xf32>
    %92 = vector.shape_cast %91 : vector<1x4x128xf32> to vector<4x128xf32>
    %cst_19 = arith.constant dense<0.000000e+00> : vector<4x128xf32>
    %93 = tpu.matmul %70, %8, %cst_19 {dimension_numbers = #tpu.dot_dimension_numbers<[1], [0], [0], [1], [0, 0, 1, 1], [], []>} : vector<4x32xf32>, vector<32x128xf32>, vector<4x128xf32> -> vector<4x128xf32>
    %94 = arith.addf %92, %93 : vector<4x128xf32>
    %95 = vector.extract_strided_slice %94 {offsets = [0, 0], sizes = [4, 96], strides = [1, 1]} : vector<4x128xf32> to vector<4x96xf32>
    %96 = arith.negf %95 : vector<4x96xf32>
    %97 = math.exp %96 : vector<4x96xf32>
    %cst_20 = arith.constant 1.000000e+00 : f32
    %98 = vector.broadcast %cst_20 : f32 to vector<4x96xf32>
    %99 = arith.addf %98, %97 : vector<4x96xf32>
    %100 = arith.divf %98, %99 : vector<4x96xf32>
    %101 = vector.extract_strided_slice %94 {offsets = [0, 96], sizes = [4, 32], strides = [1, 1]} : vector<4x128xf32> to vector<4x32xf32>
    %102 = math.tanh %101 : vector<4x32xf32>
    %103 = vector.extract_strided_slice %100 {offsets = [0, 32], sizes = [4, 32], strides = [1, 1]} : vector<4x96xf32> to vector<4x32xf32>
    %104 = arith.mulf %103, %67 : vector<4x32xf32>
    %105 = vector.extract_strided_slice %100 {offsets = [0, 0], sizes = [4, 32], strides = [1, 1]} : vector<4x96xf32> to vector<4x32xf32>
    %106 = arith.mulf %105, %102 : vector<4x32xf32>
    %107 = arith.addf %104, %106 : vector<4x32xf32>
    %108 = vector.extract_strided_slice %100 {offsets = [0, 64], sizes = [4, 32], strides = [1, 1]} : vector<4x96xf32> to vector<4x32xf32>
    %109 = math.tanh %107 : vector<4x32xf32>
    %110 = arith.mulf %108, %109 : vector<4x32xf32>
    %111 = vector.extract_strided_slice %7 {offsets = [5, 0, 128], sizes = [1, 4, 128], strides = [1, 1, 1]} : vector<8x4x256xf32> to vector<1x4x128xf32>
    %112 = vector.shape_cast %111 : vector<1x4x128xf32> to vector<4x128xf32>
    %cst_21 = arith.constant dense<0.000000e+00> : vector<4x128xf32>
    %113 = tpu.matmul %90, %9, %cst_21 {dimension_numbers = #tpu.dot_dimension_numbers<[1], [0], [0], [1], [0, 0, 1, 1], [], []>} : vector<4x32xf32>, vector<32x128xf32>, vector<4x128xf32> -> vector<4x128xf32>
    %114 = arith.addf %112, %113 : vector<4x128xf32>
    %115 = vector.extract_strided_slice %114 {offsets = [0, 0], sizes = [4, 96], strides = [1, 1]} : vector<4x128xf32> to vector<4x96xf32>
    %116 = arith.negf %115 : vector<4x96xf32>
    %117 = math.exp %116 : vector<4x96xf32>
    %cst_22 = arith.constant 1.000000e+00 : f32
    %118 = vector.broadcast %cst_22 : f32 to vector<4x96xf32>
    %119 = arith.addf %118, %117 : vector<4x96xf32>
    %120 = arith.divf %118, %119 : vector<4x96xf32>
    %121 = vector.extract_strided_slice %114 {offsets = [0, 96], sizes = [4, 32], strides = [1, 1]} : vector<4x128xf32> to vector<4x32xf32>
    %122 = math.tanh %121 : vector<4x32xf32>
    %123 = vector.extract_strided_slice %120 {offsets = [0, 32], sizes = [4, 32], strides = [1, 1]} : vector<4x96xf32> to vector<4x32xf32>
    %124 = arith.mulf %123, %87 : vector<4x32xf32>
    %125 = vector.extract_strided_slice %120 {offsets = [0, 0], sizes = [4, 32], strides = [1, 1]} : vector<4x96xf32> to vector<4x32xf32>
    %126 = arith.mulf %125, %122 : vector<4x32xf32>
    %127 = arith.addf %124, %126 : vector<4x32xf32>
    %128 = vector.extract_strided_slice %120 {offsets = [0, 64], sizes = [4, 32], strides = [1, 1]} : vector<4x96xf32> to vector<4x32xf32>
    %129 = math.tanh %127 : vector<4x32xf32>
    %130 = arith.mulf %128, %129 : vector<4x32xf32>
    %131 = vector.extract_strided_slice %7 {offsets = [3, 0, 0], sizes = [1, 4, 128], strides = [1, 1, 1]} : vector<8x4x256xf32> to vector<1x4x128xf32>
    %132 = vector.shape_cast %131 : vector<1x4x128xf32> to vector<4x128xf32>
    %cst_23 = arith.constant dense<0.000000e+00> : vector<4x128xf32>
    %133 = tpu.matmul %110, %8, %cst_23 {dimension_numbers = #tpu.dot_dimension_numbers<[1], [0], [0], [1], [0, 0, 1, 1], [], []>} : vector<4x32xf32>, vector<32x128xf32>, vector<4x128xf32> -> vector<4x128xf32>
    %134 = arith.addf %132, %133 : vector<4x128xf32>
    %135 = vector.extract_strided_slice %134 {offsets = [0, 0], sizes = [4, 96], strides = [1, 1]} : vector<4x128xf32> to vector<4x96xf32>
    %136 = arith.negf %135 : vector<4x96xf32>
    %137 = math.exp %136 : vector<4x96xf32>
    %cst_24 = arith.constant 1.000000e+00 : f32
    %138 = vector.broadcast %cst_24 : f32 to vector<4x96xf32>
    %139 = arith.addf %138, %137 : vector<4x96xf32>
    %140 = arith.divf %138, %139 : vector<4x96xf32>
    %141 = vector.extract_strided_slice %134 {offsets = [0, 96], sizes = [4, 32], strides = [1, 1]} : vector<4x128xf32> to vector<4x32xf32>
    %142 = math.tanh %141 : vector<4x32xf32>
    %143 = vector.extract_strided_slice %140 {offsets = [0, 32], sizes = [4, 32], strides = [1, 1]} : vector<4x96xf32> to vector<4x32xf32>
    %144 = arith.mulf %143, %107 : vector<4x32xf32>
    %145 = vector.extract_strided_slice %140 {offsets = [0, 0], sizes = [4, 32], strides = [1, 1]} : vector<4x96xf32> to vector<4x32xf32>
    %146 = arith.mulf %145, %142 : vector<4x32xf32>
    %147 = arith.addf %144, %146 : vector<4x32xf32>
    %148 = vector.extract_strided_slice %140 {offsets = [0, 64], sizes = [4, 32], strides = [1, 1]} : vector<4x96xf32> to vector<4x32xf32>
    %149 = math.tanh %147 : vector<4x32xf32>
    %150 = arith.mulf %148, %149 : vector<4x32xf32>
    %151 = vector.extract_strided_slice %7 {offsets = [4, 0, 128], sizes = [1, 4, 128], strides = [1, 1, 1]} : vector<8x4x256xf32> to vector<1x4x128xf32>
    %152 = vector.shape_cast %151 : vector<1x4x128xf32> to vector<4x128xf32>
    %cst_25 = arith.constant dense<0.000000e+00> : vector<4x128xf32>
    %153 = tpu.matmul %130, %9, %cst_25 {dimension_numbers = #tpu.dot_dimension_numbers<[1], [0], [0], [1], [0, 0, 1, 1], [], []>} : vector<4x32xf32>, vector<32x128xf32>, vector<4x128xf32> -> vector<4x128xf32>
    %154 = arith.addf %152, %153 : vector<4x128xf32>
    %155 = vector.extract_strided_slice %154 {offsets = [0, 0], sizes = [4, 96], strides = [1, 1]} : vector<4x128xf32> to vector<4x96xf32>
    %156 = arith.negf %155 : vector<4x96xf32>
    %157 = math.exp %156 : vector<4x96xf32>
    %cst_26 = arith.constant 1.000000e+00 : f32
    %158 = vector.broadcast %cst_26 : f32 to vector<4x96xf32>
    %159 = arith.addf %158, %157 : vector<4x96xf32>
    %160 = arith.divf %158, %159 : vector<4x96xf32>
    %161 = vector.extract_strided_slice %154 {offsets = [0, 96], sizes = [4, 32], strides = [1, 1]} : vector<4x128xf32> to vector<4x32xf32>
    %162 = math.tanh %161 : vector<4x32xf32>
    %163 = vector.extract_strided_slice %160 {offsets = [0, 32], sizes = [4, 32], strides = [1, 1]} : vector<4x96xf32> to vector<4x32xf32>
    %164 = arith.mulf %163, %127 : vector<4x32xf32>
    %165 = vector.extract_strided_slice %160 {offsets = [0, 0], sizes = [4, 32], strides = [1, 1]} : vector<4x96xf32> to vector<4x32xf32>
    %166 = arith.mulf %165, %162 : vector<4x32xf32>
    %167 = arith.addf %164, %166 : vector<4x32xf32>
    %168 = vector.extract_strided_slice %160 {offsets = [0, 64], sizes = [4, 32], strides = [1, 1]} : vector<4x96xf32> to vector<4x32xf32>
    %169 = math.tanh %167 : vector<4x32xf32>
    %170 = arith.mulf %168, %169 : vector<4x32xf32>
    %171 = vector.extract_strided_slice %7 {offsets = [4, 0, 0], sizes = [1, 4, 128], strides = [1, 1, 1]} : vector<8x4x256xf32> to vector<1x4x128xf32>
    %172 = vector.shape_cast %171 : vector<1x4x128xf32> to vector<4x128xf32>
    %cst_27 = arith.constant dense<0.000000e+00> : vector<4x128xf32>
    %173 = tpu.matmul %150, %8, %cst_27 {dimension_numbers = #tpu.dot_dimension_numbers<[1], [0], [0], [1], [0, 0, 1, 1], [], []>} : vector<4x32xf32>, vector<32x128xf32>, vector<4x128xf32> -> vector<4x128xf32>
    %174 = arith.addf %172, %173 : vector<4x128xf32>
    %175 = vector.extract_strided_slice %174 {offsets = [0, 0], sizes = [4, 96], strides = [1, 1]} : vector<4x128xf32> to vector<4x96xf32>
    %176 = arith.negf %175 : vector<4x96xf32>
    %177 = math.exp %176 : vector<4x96xf32>
    %cst_28 = arith.constant 1.000000e+00 : f32
    %178 = vector.broadcast %cst_28 : f32 to vector<4x96xf32>
    %179 = arith.addf %178, %177 : vector<4x96xf32>
    %180 = arith.divf %178, %179 : vector<4x96xf32>
    %181 = vector.extract_strided_slice %174 {offsets = [0, 96], sizes = [4, 32], strides = [1, 1]} : vector<4x128xf32> to vector<4x32xf32>
    %182 = math.tanh %181 : vector<4x32xf32>
    %183 = vector.extract_strided_slice %180 {offsets = [0, 32], sizes = [4, 32], strides = [1, 1]} : vector<4x96xf32> to vector<4x32xf32>
    %184 = arith.mulf %183, %147 : vector<4x32xf32>
    %185 = vector.extract_strided_slice %180 {offsets = [0, 0], sizes = [4, 32], strides = [1, 1]} : vector<4x96xf32> to vector<4x32xf32>
    %186 = arith.mulf %185, %182 : vector<4x32xf32>
    %187 = arith.addf %184, %186 : vector<4x32xf32>
    %188 = vector.extract_strided_slice %180 {offsets = [0, 64], sizes = [4, 32], strides = [1, 1]} : vector<4x96xf32> to vector<4x32xf32>
    %189 = math.tanh %187 : vector<4x32xf32>
    %190 = arith.mulf %188, %189 : vector<4x32xf32>
    %191 = vector.extract_strided_slice %7 {offsets = [3, 0, 128], sizes = [1, 4, 128], strides = [1, 1, 1]} : vector<8x4x256xf32> to vector<1x4x128xf32>
    %192 = vector.shape_cast %191 : vector<1x4x128xf32> to vector<4x128xf32>
    %cst_29 = arith.constant dense<0.000000e+00> : vector<4x128xf32>
    %193 = tpu.matmul %170, %9, %cst_29 {dimension_numbers = #tpu.dot_dimension_numbers<[1], [0], [0], [1], [0, 0, 1, 1], [], []>} : vector<4x32xf32>, vector<32x128xf32>, vector<4x128xf32> -> vector<4x128xf32>
    %194 = arith.addf %192, %193 : vector<4x128xf32>
    %195 = vector.extract_strided_slice %194 {offsets = [0, 0], sizes = [4, 96], strides = [1, 1]} : vector<4x128xf32> to vector<4x96xf32>
    %196 = arith.negf %195 : vector<4x96xf32>
    %197 = math.exp %196 : vector<4x96xf32>
    %cst_30 = arith.constant 1.000000e+00 : f32
    %198 = vector.broadcast %cst_30 : f32 to vector<4x96xf32>
    %199 = arith.addf %198, %197 : vector<4x96xf32>
    %200 = arith.divf %198, %199 : vector<4x96xf32>
    %201 = vector.extract_strided_slice %194 {offsets = [0, 96], sizes = [4, 32], strides = [1, 1]} : vector<4x128xf32> to vector<4x32xf32>
    %202 = math.tanh %201 : vector<4x32xf32>
    %203 = vector.extract_strided_slice %200 {offsets = [0, 32], sizes = [4, 32], strides = [1, 1]} : vector<4x96xf32> to vector<4x32xf32>
    %204 = arith.mulf %203, %167 : vector<4x32xf32>
    %205 = vector.extract_strided_slice %200 {offsets = [0, 0], sizes = [4, 32], strides = [1, 1]} : vector<4x96xf32> to vector<4x32xf32>
    %206 = arith.mulf %205, %202 : vector<4x32xf32>
    %207 = arith.addf %204, %206 : vector<4x32xf32>
    %208 = vector.extract_strided_slice %200 {offsets = [0, 64], sizes = [4, 32], strides = [1, 1]} : vector<4x96xf32> to vector<4x32xf32>
    %209 = math.tanh %207 : vector<4x32xf32>
    %210 = arith.mulf %208, %209 : vector<4x32xf32>
    %211 = vector.extract_strided_slice %7 {offsets = [5, 0, 0], sizes = [1, 4, 128], strides = [1, 1, 1]} : vector<8x4x256xf32> to vector<1x4x128xf32>
    %212 = vector.shape_cast %211 : vector<1x4x128xf32> to vector<4x128xf32>
    %cst_31 = arith.constant dense<0.000000e+00> : vector<4x128xf32>
    %213 = tpu.matmul %190, %8, %cst_31 {dimension_numbers = #tpu.dot_dimension_numbers<[1], [0], [0], [1], [0, 0, 1, 1], [], []>} : vector<4x32xf32>, vector<32x128xf32>, vector<4x128xf32> -> vector<4x128xf32>
    %214 = arith.addf %212, %213 : vector<4x128xf32>
    %215 = vector.extract_strided_slice %214 {offsets = [0, 0], sizes = [4, 96], strides = [1, 1]} : vector<4x128xf32> to vector<4x96xf32>
    %216 = arith.negf %215 : vector<4x96xf32>
    %217 = math.exp %216 : vector<4x96xf32>
    %cst_32 = arith.constant 1.000000e+00 : f32
    %218 = vector.broadcast %cst_32 : f32 to vector<4x96xf32>
    %219 = arith.addf %218, %217 : vector<4x96xf32>
    %220 = arith.divf %218, %219 : vector<4x96xf32>
    %221 = vector.extract_strided_slice %214 {offsets = [0, 96], sizes = [4, 32], strides = [1, 1]} : vector<4x128xf32> to vector<4x32xf32>
    %222 = math.tanh %221 : vector<4x32xf32>
    %223 = vector.extract_strided_slice %220 {offsets = [0, 32], sizes = [4, 32], strides = [1, 1]} : vector<4x96xf32> to vector<4x32xf32>
    %224 = arith.mulf %223, %187 : vector<4x32xf32>
    %225 = vector.extract_strided_slice %220 {offsets = [0, 0], sizes = [4, 32], strides = [1, 1]} : vector<4x96xf32> to vector<4x32xf32>
    %226 = arith.mulf %225, %222 : vector<4x32xf32>
    %227 = arith.addf %224, %226 : vector<4x32xf32>
    %228 = vector.extract_strided_slice %220 {offsets = [0, 64], sizes = [4, 32], strides = [1, 1]} : vector<4x96xf32> to vector<4x32xf32>
    %229 = math.tanh %227 : vector<4x32xf32>
    %230 = arith.mulf %228, %229 : vector<4x32xf32>
    %231 = vector.extract_strided_slice %7 {offsets = [2, 0, 128], sizes = [1, 4, 128], strides = [1, 1, 1]} : vector<8x4x256xf32> to vector<1x4x128xf32>
    %232 = vector.shape_cast %231 : vector<1x4x128xf32> to vector<4x128xf32>
    %cst_33 = arith.constant dense<0.000000e+00> : vector<4x128xf32>
    %233 = tpu.matmul %210, %9, %cst_33 {dimension_numbers = #tpu.dot_dimension_numbers<[1], [0], [0], [1], [0, 0, 1, 1], [], []>} : vector<4x32xf32>, vector<32x128xf32>, vector<4x128xf32> -> vector<4x128xf32>
    %234 = arith.addf %232, %233 : vector<4x128xf32>
    %235 = vector.extract_strided_slice %234 {offsets = [0, 0], sizes = [4, 96], strides = [1, 1]} : vector<4x128xf32> to vector<4x96xf32>
    %236 = arith.negf %235 : vector<4x96xf32>
    %237 = math.exp %236 : vector<4x96xf32>
    %cst_34 = arith.constant 1.000000e+00 : f32
    %238 = vector.broadcast %cst_34 : f32 to vector<4x96xf32>
    %239 = arith.addf %238, %237 : vector<4x96xf32>
    %240 = arith.divf %238, %239 : vector<4x96xf32>
    %241 = vector.extract_strided_slice %234 {offsets = [0, 96], sizes = [4, 32], strides = [1, 1]} : vector<4x128xf32> to vector<4x32xf32>
    %242 = math.tanh %241 : vector<4x32xf32>
    %243 = vector.extract_strided_slice %240 {offsets = [0, 32], sizes = [4, 32], strides = [1, 1]} : vector<4x96xf32> to vector<4x32xf32>
    %244 = arith.mulf %243, %207 : vector<4x32xf32>
    %245 = vector.extract_strided_slice %240 {offsets = [0, 0], sizes = [4, 32], strides = [1, 1]} : vector<4x96xf32> to vector<4x32xf32>
    %246 = arith.mulf %245, %242 : vector<4x32xf32>
    %247 = arith.addf %244, %246 : vector<4x32xf32>
    %248 = vector.extract_strided_slice %240 {offsets = [0, 64], sizes = [4, 32], strides = [1, 1]} : vector<4x96xf32> to vector<4x32xf32>
    %249 = math.tanh %247 : vector<4x32xf32>
    %250 = arith.mulf %248, %249 : vector<4x32xf32>
    %251 = vector.extract_strided_slice %7 {offsets = [6, 0, 0], sizes = [1, 4, 128], strides = [1, 1, 1]} : vector<8x4x256xf32> to vector<1x4x128xf32>
    %252 = vector.shape_cast %251 : vector<1x4x128xf32> to vector<4x128xf32>
    %cst_35 = arith.constant dense<0.000000e+00> : vector<4x128xf32>
    %253 = tpu.matmul %230, %8, %cst_35 {dimension_numbers = #tpu.dot_dimension_numbers<[1], [0], [0], [1], [0, 0, 1, 1], [], []>} : vector<4x32xf32>, vector<32x128xf32>, vector<4x128xf32> -> vector<4x128xf32>
    %254 = arith.addf %252, %253 : vector<4x128xf32>
    %255 = vector.extract_strided_slice %254 {offsets = [0, 0], sizes = [4, 96], strides = [1, 1]} : vector<4x128xf32> to vector<4x96xf32>
    %256 = arith.negf %255 : vector<4x96xf32>
    %257 = math.exp %256 : vector<4x96xf32>
    %cst_36 = arith.constant 1.000000e+00 : f32
    %258 = vector.broadcast %cst_36 : f32 to vector<4x96xf32>
    %259 = arith.addf %258, %257 : vector<4x96xf32>
    %260 = arith.divf %258, %259 : vector<4x96xf32>
    %261 = vector.extract_strided_slice %254 {offsets = [0, 96], sizes = [4, 32], strides = [1, 1]} : vector<4x128xf32> to vector<4x32xf32>
    %262 = math.tanh %261 : vector<4x32xf32>
    %263 = vector.extract_strided_slice %260 {offsets = [0, 32], sizes = [4, 32], strides = [1, 1]} : vector<4x96xf32> to vector<4x32xf32>
    %264 = arith.mulf %263, %227 : vector<4x32xf32>
    %265 = vector.extract_strided_slice %260 {offsets = [0, 0], sizes = [4, 32], strides = [1, 1]} : vector<4x96xf32> to vector<4x32xf32>
    %266 = arith.mulf %265, %262 : vector<4x32xf32>
    %267 = arith.addf %264, %266 : vector<4x32xf32>
    %268 = vector.extract_strided_slice %260 {offsets = [0, 64], sizes = [4, 32], strides = [1, 1]} : vector<4x96xf32> to vector<4x32xf32>
    %269 = math.tanh %267 : vector<4x32xf32>
    %270 = arith.mulf %268, %269 : vector<4x32xf32>
    %271 = vector.extract_strided_slice %7 {offsets = [1, 0, 128], sizes = [1, 4, 128], strides = [1, 1, 1]} : vector<8x4x256xf32> to vector<1x4x128xf32>
    %272 = vector.shape_cast %271 : vector<1x4x128xf32> to vector<4x128xf32>
    %cst_37 = arith.constant dense<0.000000e+00> : vector<4x128xf32>
    %273 = tpu.matmul %250, %9, %cst_37 {dimension_numbers = #tpu.dot_dimension_numbers<[1], [0], [0], [1], [0, 0, 1, 1], [], []>} : vector<4x32xf32>, vector<32x128xf32>, vector<4x128xf32> -> vector<4x128xf32>
    %274 = arith.addf %272, %273 : vector<4x128xf32>
    %275 = vector.extract_strided_slice %274 {offsets = [0, 0], sizes = [4, 96], strides = [1, 1]} : vector<4x128xf32> to vector<4x96xf32>
    %276 = arith.negf %275 : vector<4x96xf32>
    %277 = math.exp %276 : vector<4x96xf32>
    %cst_38 = arith.constant 1.000000e+00 : f32
    %278 = vector.broadcast %cst_38 : f32 to vector<4x96xf32>
    %279 = arith.addf %278, %277 : vector<4x96xf32>
    %280 = arith.divf %278, %279 : vector<4x96xf32>
    %281 = vector.extract_strided_slice %274 {offsets = [0, 96], sizes = [4, 32], strides = [1, 1]} : vector<4x128xf32> to vector<4x32xf32>
    %282 = math.tanh %281 : vector<4x32xf32>
    %283 = vector.extract_strided_slice %280 {offsets = [0, 32], sizes = [4, 32], strides = [1, 1]} : vector<4x96xf32> to vector<4x32xf32>
    %284 = arith.mulf %283, %247 : vector<4x32xf32>
    %285 = vector.extract_strided_slice %280 {offsets = [0, 0], sizes = [4, 32], strides = [1, 1]} : vector<4x96xf32> to vector<4x32xf32>
    %286 = arith.mulf %285, %282 : vector<4x32xf32>
    %287 = arith.addf %284, %286 : vector<4x32xf32>
    %288 = vector.extract_strided_slice %280 {offsets = [0, 64], sizes = [4, 32], strides = [1, 1]} : vector<4x96xf32> to vector<4x32xf32>
    %289 = math.tanh %287 : vector<4x32xf32>
    %290 = arith.mulf %288, %289 : vector<4x32xf32>
    %291 = vector.extract_strided_slice %7 {offsets = [7, 0, 0], sizes = [1, 4, 128], strides = [1, 1, 1]} : vector<8x4x256xf32> to vector<1x4x128xf32>
    %292 = vector.shape_cast %291 : vector<1x4x128xf32> to vector<4x128xf32>
    %cst_39 = arith.constant dense<0.000000e+00> : vector<4x128xf32>
    %293 = tpu.matmul %270, %8, %cst_39 {dimension_numbers = #tpu.dot_dimension_numbers<[1], [0], [0], [1], [0, 0, 1, 1], [], []>} : vector<4x32xf32>, vector<32x128xf32>, vector<4x128xf32> -> vector<4x128xf32>
    %294 = arith.addf %292, %293 : vector<4x128xf32>
    %295 = vector.extract_strided_slice %294 {offsets = [0, 0], sizes = [4, 96], strides = [1, 1]} : vector<4x128xf32> to vector<4x96xf32>
    %296 = arith.negf %295 : vector<4x96xf32>
    %297 = math.exp %296 : vector<4x96xf32>
    %cst_40 = arith.constant 1.000000e+00 : f32
    %298 = vector.broadcast %cst_40 : f32 to vector<4x96xf32>
    %299 = arith.addf %298, %297 : vector<4x96xf32>
    %300 = arith.divf %298, %299 : vector<4x96xf32>
    %301 = vector.extract_strided_slice %294 {offsets = [0, 96], sizes = [4, 32], strides = [1, 1]} : vector<4x128xf32> to vector<4x32xf32>
    %302 = math.tanh %301 : vector<4x32xf32>
    %303 = vector.extract_strided_slice %300 {offsets = [0, 32], sizes = [4, 32], strides = [1, 1]} : vector<4x96xf32> to vector<4x32xf32>
    %304 = arith.mulf %303, %267 : vector<4x32xf32>
    %305 = vector.extract_strided_slice %300 {offsets = [0, 0], sizes = [4, 32], strides = [1, 1]} : vector<4x96xf32> to vector<4x32xf32>
    %306 = arith.mulf %305, %302 : vector<4x32xf32>
    %307 = arith.addf %304, %306 : vector<4x32xf32>
    %308 = vector.extract_strided_slice %300 {offsets = [0, 64], sizes = [4, 32], strides = [1, 1]} : vector<4x96xf32> to vector<4x32xf32>
    %309 = math.tanh %307 : vector<4x32xf32>
    %310 = arith.mulf %308, %309 : vector<4x32xf32>
    %311 = vector.extract_strided_slice %7 {offsets = [0, 0, 128], sizes = [1, 4, 128], strides = [1, 1, 1]} : vector<8x4x256xf32> to vector<1x4x128xf32>
    %312 = vector.shape_cast %311 : vector<1x4x128xf32> to vector<4x128xf32>
    %cst_41 = arith.constant dense<0.000000e+00> : vector<4x128xf32>
    %313 = tpu.matmul %290, %9, %cst_41 {dimension_numbers = #tpu.dot_dimension_numbers<[1], [0], [0], [1], [0, 0, 1, 1], [], []>} : vector<4x32xf32>, vector<32x128xf32>, vector<4x128xf32> -> vector<4x128xf32>
    %314 = arith.addf %312, %313 : vector<4x128xf32>
    %315 = vector.extract_strided_slice %314 {offsets = [0, 0], sizes = [4, 96], strides = [1, 1]} : vector<4x128xf32> to vector<4x96xf32>
    %316 = arith.negf %315 : vector<4x96xf32>
    %317 = math.exp %316 : vector<4x96xf32>
    %cst_42 = arith.constant 1.000000e+00 : f32
    %318 = vector.broadcast %cst_42 : f32 to vector<4x96xf32>
    %319 = arith.addf %318, %317 : vector<4x96xf32>
    %320 = arith.divf %318, %319 : vector<4x96xf32>
    %321 = vector.extract_strided_slice %314 {offsets = [0, 96], sizes = [4, 32], strides = [1, 1]} : vector<4x128xf32> to vector<4x32xf32>
    %322 = math.tanh %321 : vector<4x32xf32>
    %323 = vector.extract_strided_slice %320 {offsets = [0, 32], sizes = [4, 32], strides = [1, 1]} : vector<4x96xf32> to vector<4x32xf32>
    %324 = arith.mulf %323, %287 : vector<4x32xf32>
    %325 = vector.extract_strided_slice %320 {offsets = [0, 0], sizes = [4, 32], strides = [1, 1]} : vector<4x96xf32> to vector<4x32xf32>
    %326 = arith.mulf %325, %322 : vector<4x32xf32>
    %327 = arith.addf %324, %326 : vector<4x32xf32>
    %328 = vector.extract_strided_slice %320 {offsets = [0, 64], sizes = [4, 32], strides = [1, 1]} : vector<4x96xf32> to vector<4x32xf32>
    %329 = math.tanh %327 : vector<4x32xf32>
    %330 = arith.mulf %328, %329 : vector<4x32xf32>
    %331 = arith.addf %30, %330 : vector<4x32xf32>
    %332 = arith.addf %70, %290 : vector<4x32xf32>
    %333 = arith.addf %110, %250 : vector<4x32xf32>
    %334 = arith.addf %150, %210 : vector<4x32xf32>
    %335 = arith.addf %190, %170 : vector<4x32xf32>
    %336 = arith.addf %230, %130 : vector<4x32xf32>
    %337 = arith.addf %270, %90 : vector<4x32xf32>
    %338 = arith.addf %310, %50 : vector<4x32xf32>
    %339 = vector.shape_cast %331 : vector<4x32xf32> to vector<1x4x32xf32>
    %340 = vector.shape_cast %332 : vector<4x32xf32> to vector<1x4x32xf32>
    %341 = vector.shape_cast %333 : vector<4x32xf32> to vector<1x4x32xf32>
    %342 = vector.shape_cast %334 : vector<4x32xf32> to vector<1x4x32xf32>
    %343 = vector.shape_cast %335 : vector<4x32xf32> to vector<1x4x32xf32>
    %344 = vector.shape_cast %336 : vector<4x32xf32> to vector<1x4x32xf32>
    %345 = vector.shape_cast %337 : vector<4x32xf32> to vector<1x4x32xf32>
    %346 = vector.shape_cast %338 : vector<4x32xf32> to vector<1x4x32xf32>
    %347 = tpu.concatenate %339, %340, %341, %342, %343, %344, %345, %346 in 0 : vector<1x4x32xf32>, vector<1x4x32xf32>, vector<1x4x32xf32>, vector<1x4x32xf32>, vector<1x4x32xf32>, vector<1x4x32xf32>, vector<1x4x32xf32>, vector<1x4x32xf32> -> vector<8x4x32xf32>
    %c0_43 = arith.constant 0 : index
    %c0_44 = arith.constant 0 : index
    %c0_45 = arith.constant 0 : index
    %348 = vector.load %arg6[%c0_43, %c0_44, %c0_45] : memref<8x4x32xf32, #tpu.memory_space<vmem>>, vector<8x4x32xf32>
    tpu.vector_store %arg6[%c0_43, %c0_44, %c0_45], %347 {strides = array<i32>} : memref<8x4x32xf32, #tpu.memory_space<vmem>>, vector<8x4x32xf32>,
    return
  }
  func.func @transform_0(%arg0: i32) -> (i32, i32, i32) {
    %c0_i32 = arith.constant 0 : i32
    %c0_i32_0 = arith.constant 0 : i32
    %c0_i32_1 = arith.constant 0 : i32
    %c0_i32_2 = arith.constant 0 : i32
    return %c0_i32, %c0_i32_0, %c0_i32_1 : i32, i32, i32
  }
  func.func @transform_1(%arg0: i32) -> (i32, i32) {
    %c0_i32 = arith.constant 0 : i32
    %c0_i32_0 = arith.constant 0 : i32
    %c0_i32_1 = arith.constant 0 : i32
    return %c0_i32, %c0_i32_0 : i32, i32
  }
  func.func @transform_2(%arg0: i32) -> (i32, i32) {
    %c0_i32 = arith.constant 0 : i32
    %c0_i32_0 = arith.constant 0 : i32
    %c0_i32_1 = arith.constant 0 : i32
    return %c0_i32, %c0_i32_0 : i32, i32
  }
  func.func @transform_3(%arg0: i32) -> (i32, i32) {
    %c0_i32 = arith.constant 0 : i32
    %c0_i32_0 = arith.constant 0 : i32
    %c0_i32_1 = arith.constant 0 : i32
    return %c0_i32, %c0_i32_0 : i32, i32
  }
  func.func @transform_4(%arg0: i32) -> (i32, i32) {
    %c0_i32 = arith.constant 0 : i32
    %c0_i32_0 = arith.constant 0 : i32
    %c0_i32_1 = arith.constant 0 : i32
    return %c0_i32, %c0_i32_0 : i32, i32
  }
  func.func @transform_5(%arg0: i32) -> (i32, i32, i32) {
    %c0_i32 = arith.constant 0 : i32
    %c0_i32_0 = arith.constant 0 : i32
    %c0_i32_1 = arith.constant 0 : i32
    %c0_i32_2 = arith.constant 0 : i32
    return %c0_i32, %c0_i32_0, %c0_i32_1 : i32, i32, i32
  }
}

</mosaic_0001>

<bundles_post_ra>
// kernel: tpu_custom_call.1
= control target key start
LH: loop header
LB: loop body
LE: loop exit
PB: predicated region body
PF: predicated region fallthrough
CT: control target
= control target key end

     0   :  { %10 = vsyncpa [#allocation3], 0  ;;  %s2083_s0 = inlined_call_operand.hbm [shape: f32[8,4,32], index: 0, kind: input, shape index: {}]   ;;  %s2084_s1 = inlined_call_operand.hbm [shape: f32[32,256], index: 1, kind: input, shape index: {}]   ;;  %s2085_s2 = inlined_call_operand.hbm [shape: f32[32,128], index: 2, kind: input, shape index: {}]   ;;  %s2086_s3 = inlined_call_operand.hbm [shape: f32[32,128], index: 3, kind: input, shape index: {}]   ;;  %s2087_s4 = inlined_call_operand.vmem [shape: f32[1,256], index: 4, kind: input, shape index: {}]   ;;  %s2088_s5 = inlined_call_operand.hbm [shape: f32[8,4,32], index: 5, kind: output, shape index: {}]  }
   0x1   :  { %11 = vsyncpa [#allocation6], 0 }
   0x2   :  { %12 = vsyncpa [#allocation9], 0  ;;  %s31_s20 = sshll.u32 %s2084_s1, 4  ;;  %s32_s20 = int_to_ptr.hbm [resolvable:$true] %s31_s20 }
   0x3   :  { %13 = vsyncpa [#allocation4], 0  ;;  %s1682_s21 = smov [#allocation5]   ;;  %s18_s25 = sshll.u32 %s2083_s0, 4  ;;  %s19_s25 = int_to_ptr.hbm [resolvable:$true] %s18_s25 }
   0x4   :  { %s33_s22 = sshll.u32 %s1682_s21, 4  ;;  %s1683_s26 = smov 256   ;;  %s34_s22 = int_to_ptr.vmem [resolvable:$true] %s33_s22 }
   0x5   :  { %s1684_s27 = smov 16   ;;  %s1685_s28 = smov [#allocation2]  }
   0x6   :  { %39 = dma.hbm_to_vmem [thread:$0]  %s32_s20, 1024, %s34_s22, [#allocation6], %s1683_s26, %s1683_s26, %s1684_s27  }
   0x7   :  { %s20_s29 = sshll.u32 %s1685_s28, 4  ;;  %s1686_s30 = smov 64   ;;  %s21_s29 = int_to_ptr.vmem [resolvable:$true] %s20_s29 }
   0x8   :  { %s1687_s6 = smov 4   ;;  %s44_s8 = sshll.u32 %s2085_s2, 4  ;;  %s45_s8 = int_to_ptr.hbm [resolvable:$true] %s44_s8 }
   0x9   :  { %26 = dma.hbm_to_vmem [thread:$0]  %s19_s25, 512, %s21_s29, [#allocation3], %s1686_s30, %s1686_s30, %s1687_s6  }
   0xa   :  { %s1688_s9 = smov [#allocation7]   ;;  %s57_s12 = sshll.u32 %s2086_s3, 4  ;;  %s58_s12 = int_to_ptr.hbm [resolvable:$true] %s57_s12 }
   0xb   :  { %s46_s0 = sshll.u32 %s1688_s9, 4  ;;  %s1689_s13 = smov 128   ;;  %s47_s0 = int_to_ptr.vmem [resolvable:$true] %s46_s0 }
   0xc   :  { %s1690_s14 = smov 8   ;;  %s1691_s15 = smov [#allocation8]  }
   0xd   :  { %52 = dma.hbm_to_vmem [thread:$0]  %s45_s8, 512, %s47_s0, [#allocation6], %s1689_s13, %s1689_s13, %s1690_s14  }
   0xe   :  { %s59_s16 = sshll.u32 %s1691_s15, 4  ;;  %s60_s16 = int_to_ptr.vmem [resolvable:$true] %s59_s16 }
   0xf   :  { %65 = dma.hbm_to_vmem [thread:$0]  %s58_s12, 512, %s60_s16, [#allocation9], %s1689_s13, %s1689_s13, %s1690_s14  }
  0x10   :  { %1674 = dma.done.wait [#allocation3], 512  }
  0x11   :  { %1675 = vsyncadd [#allocation3], 4294966784 }
  0x12   :  { %1676 = dma.done.wait [#allocation6], 1536  }
  0x13   :  { %1677 = vsyncadd [#allocation6], 4294965760 }
  0x14   :  { %1678 = dma.done.wait [#allocation9], 512  }
  0x15   :  { %1679 = vsyncadd [#allocation9], 4294966784  ;;  %v1740_v0 = vld [vmem:[#allocation7 + $0x18] sm:$0xff]  ;;  %v1742_v2 = vld [vmem:[#allocation7 + $0x10] sm:$0xff]  ;;  %v1692_v21 = vmov 0.0   ;;  %vm133_vm0 = vcmask 261120  }
  0x16   :  { %v99_v1 = vld [vmem:[#allocation5 + $0x38] sm:$0xff]  ;;  %256 = vmatpush.msra.mxu2 %v1740_v0  ;;  %v98_v3 = vld [vmem:[#allocation5 + $0x30] sm:$0xff]  ;;  %v97_v4 = vld [vmem:[#allocation5 + $0x28] sm:$0xff]  ;;  %vm212_vm1 = vcmask 1043456   ;;  %s1694_s17 = smov [#allocation10]   ;;  %s1360_s21 = sshll.u32 %s2088_s5, 4  ;;  %s1361_s21 = int_to_ptr.hbm [resolvable:$true] %s1360_s21 }
  0x17   :  { %183 = vmatpush.msra.mxu1 %v99_v1  ;;  %v1745_v5 = vld [vmem:[#allocation7 + $0x8] sm:$0xff]  ;;  %154 = vmatpush.msra.mxu0 %v98_v3  ;;  %v96_v6 = vld [vmem:[#allocation5 + $0x20] sm:$0xff]  ;;  %v95_v7 = vld [vmem:[#allocation5 + $0x18] sm:$0xff]  ;;  %s1358_s18 = sshll.u32 %s1694_s17, 4  ;;  %s1359_s18 = int_to_ptr.vmem [resolvable:$true] %s1358_s18 }
  0x18   :  { %v1747_v8 = vld [vmem:[#allocation7] sm:$0xff]  ;;  %257 = vmatpush.msra.mxu2 %v1742_v2  ;;  %v94_v9 = vld [vmem:[#allocation5 + $0x10] sm:$0xff]  ;;  %v93_v10 = vld [vmem:[#allocation5 + $0x8] sm:$0xff] }
  0x19   :  { %184 = vmatpush.msra.mxu1 %v97_v4  ;;  %v84_v11 = vld [vmem:[#allocation2] sm:$0xf]  ;;  %155 = vmatpush.msra.mxu0 %v96_v6  ;;  %v85_v12 = vld [vmem:[#allocation2 + $0x4] sm:$0xf]  ;;  %v1750_v14 = vld [vmem:[#allocation8 + $0x18] sm:$0xff] }
  0x1a   :  { %114 = vst [vmem:[#allocation1] ss:$2 sm:$0xff] %v84_v11  ;;  %v92_v13 = vld [vmem:[#allocation5] sm:$0xff]  ;;  %258 = vmatpush.msra.mxu2 %v1745_v5  ;;  %v86_v15 = vld [vmem:[#allocation2 + $0x8] sm:$0xf]  ;;  %316 = vmatpush.msra.mxu3 %v1750_v14  ;;  %v1755_v19 = vld [vmem:[#allocation8 + $0x10] sm:$0xff] }
  0x1b   :  { %185 = vmatpush.msra.mxu1 %v95_v7  ;;  %116 = vst [vmem:[#allocation1 + $0x1] ss:$2 sm:$0xff] %v85_v12  ;;  %v87_v16 = vld [vmem:[#allocation2 + $0xc] sm:$0xf]  ;;  %156 = vmatpush.msra.mxu0 %v94_v9  ;;  %v88_v17 = vld [vmem:[#allocation2 + $0x10] sm:$0xf] }
  0x1c   :  { %118 = vst [vmem:[#allocation1 + $0x10] ss:$2 sm:$0xff] %v86_v15  ;;  %v89_v18 = vld [vmem:[#allocation2 + $0x14] sm:$0xf]  ;;  %259 = vmatpush.msra.mxu2 %v1747_v8  ;;  %v90_v20 = vld [vmem:[#allocation2 + $0x18] sm:$0xf]  ;;  %317 = vmatpush.msra.mxu3 %v1755_v19 }
  0x1d   :  { %186 = vmatpush.msra.mxu1 %v93_v10  ;;  %120 = vst [vmem:[#allocation1 + $0x11] ss:$2 sm:$0xff] %v87_v16  ;;  %260 = vmatmul.f32.vlgmr.msra.gmra.mxu2 %v1692_v21  ;;  %v91_v22 = vld [vmem:[#allocation2 + $0x1c] sm:$0xf]  ;;  %v1757_v23 = vld [vmem:[#allocation8 + $0x8] sm:$0xff]  ;;  %v1764_v24 = vld [vmem:[#allocation8] sm:$0xff] }
  0x1e   :  { %157 = vmatpush.msra.mxu0 %v92_v13  ;;  %122 = vst [vmem:[#allocation1 + $0x20] ss:$2 sm:$0xff] %v88_v17  ;;  %381 = vmatpush.msrb.mxu2 %v1740_v0  ;;  %v100_v29 = vld [vmem:[%s2087_s4] sm:$0x3]  ;;  %s1693_s4 = smov 32  }
  0x1f   :  { %124 = vst [vmem:[#allocation1 + $0x21] ss:$2 sm:$0xff] %v89_v18  ;;  %844 = vmatpush.msrb.mxu1 %v1750_v14  ;;  %318 = vmatpush.msra.mxu3 %v1757_v23  ;;  %v103_v30 = vperm.slane %v100_v29, 1  ;;  %v102_v31 = vperm.slane %v100_v29, 0 }
  0x20   :  { %126 = vst [vmem:[#allocation1 + $0x30] ss:$2 sm:$0xff] %v90_v20  ;;  %777 = vmatpush.msrb.mxu0 %v1740_v0  ;;  %382 = vmatpush.msrb.mxu2 %v1742_v2 }
  0x21   :  { %128 = vst [vmem:[#allocation1 + $0x31] ss:$2 sm:$0xff] %v91_v22  ;;  %845 = vmatpush.msrb.mxu1 %v1755_v19  ;;  %319 = vmatpush.msra.mxu3 %v1764_v24 }
  0x22   :  { %v129_v25 = vld.sshfl [vmem:[#allocation1] sm:$0xff pattern:$0x75316420]  ;;  %778 = vmatpush.msrb.mxu0 %v1742_v2  ;;  %383 = vmatpush.msrb.mxu2 %v1745_v5 }
  0x23   :  { %1379 = vmatmul.msk.f32.vlgmr.msra.gmra.mxu1 %vm133_vm0, %v129_v25  ;;  %1375 = vmatmul.msk.f32.vlgmr.msra.gmra.mxu0 %vm133_vm0, %v129_v25 }
  0x24   :  { %320 = vmatmul.f32.vlgmr.msra.gmra.mxu3 %v1692_v21  ;;  %779 = vmatpush.msrb.mxu0 %v1745_v5  ;;  %v130_v26 = vld.sshfl [vmem:[#allocation1 + $0x10] sm:$0xff pattern:$0x75316420] }
  0x25   :  { %384 = vmatpush.msrb.mxu2 %v1747_v8  ;;  %448 = vmatpush.msrb.mxu3 %v1750_v14 }
  0x26   :  { %780 = vmatpush.msrb.mxu0 %v1747_v8  ;;  %846 = vmatpush.msrb.mxu1 %v1757_v23  ;;  %v131_v27 = vld.sshfl [vmem:[#allocation1 + $0x20] sm:$0xff pattern:$0x75316420] }
  0x27   :  { %513 = vmatpush.msra.mxu2 %v1740_v0  ;;  %449 = vmatpush.msrb.mxu3 %v1755_v19 }
  0x28   :  { %1041 = vmatpush.msra.mxu0 %v1740_v0  ;;  %847 = vmatpush.msrb.mxu1 %v1764_v24  ;;  %v132_v28 = vld.sshfl [vmem:[#allocation1 + $0x30] sm:$0xff pattern:$0x75316420] }
  0x29   :  { %514 = vmatpush.msra.mxu2 %v1742_v2  ;;  %450 = vmatpush.msrb.mxu3 %v1757_v23 }
  0x2a   :  { %1042 = vmatpush.msra.mxu0 %v1742_v2  ;;  %1108 = vmatpush.msra.mxu1 %v1750_v14 }
  0x2b   :  { %1380 = vmatmul.msk.f32.gmra.mxu1 %vm133_vm0, %v130_v26  ;;  %1376 = vmatmul.msk.f32.gmra.mxu0 %vm133_vm0, %v130_v26 }
  0x2c   :  { %451 = vmatpush.msrb.mxu3 %v1764_v24  ;;  %515 = vmatpush.msra.mxu2 %v1745_v5 }
  0x2d   :  { %1043 = vmatpush.msra.mxu0 %v1745_v5  ;;  %1109 = vmatpush.msra.mxu1 %v1755_v19 }
  0x2e   :  { %580 = vmatpush.msra.mxu3 %v1750_v14  ;;  %516 = vmatpush.msra.mxu2 %v1747_v8 }
  0x2f   :  { %1044 = vmatpush.msra.mxu0 %v1747_v8  ;;  %1110 = vmatpush.msra.mxu1 %v1757_v23 }
  0x30   :  { %581 = vmatpush.msra.mxu3 %v1755_v19 }
  0x31   :  { %1111 = vmatpush.msra.mxu1 %v1764_v24 }
  0x32   :  { %582 = vmatpush.msra.mxu3 %v1757_v23 }
  0x33   :  { %1381 = vmatmul.msk.f32.gmra.mxu1 %vm133_vm0, %v131_v27  ;;  %1377 = vmatmul.msk.f32.gmra.mxu0 %vm133_vm0, %v131_v27 }
  0x34   :  { %583 = vmatpush.msra.mxu3 %v1764_v24 }
  0x3b   :  { %1382 = vmatmul.msk.f32.gmra.mxu1 %vm133_vm0, %v132_v28  ;;  %1378 = vmatmul.msk.f32.gmra.mxu0 %vm133_vm0, %v132_v28 }
  0xa0   :  { %v188_v32 = vpop.f32.mrf.mxu1  ;;  %v159_v33 = vpop.f32.mrf.mxu0 }
  0xa1   :  { %v189_v34 = vadd.f32 %v188_v32, %v103_v30  ;;  %v160_v35 = vadd.f32 %v159_v33, %v102_v31  ;;  %v261_v37 = vpop.f32.mrf.mxu2 }
  0xa3   :  { %v208_v36 = vrot.slane %v189_v34, 4 }
  0xa5   :  { %v1808_v38 = vsel %vm212_vm1, %v160_v35, %v208_v36  ;;  %v1811_v39 = vsel %vm212_vm1, %v208_v36, %v160_v35 }
  0xa6   :  { %v264_v40 = vadd.f32 %v261_v37, %v1808_v38 }
  0xa7   :  { %v321_v1 = vpop.f32.mrf.mxu3 }
  0xa8   :  { %1426 = vtanh.f32 %v264_v40  ;;  %v191_v41 = vpop.f32.mrf.mxu1  ;;  %v162_v42 = vpop.f32.mrf.mxu0  ;;  %v1383_v7 = vmul.f32 -1.442695, %v264_v40 }
  0xa9   :  { %v192_v43 = vadd.f32 %v191_v41, %v103_v30  ;;  %v163_v44 = vadd.f32 %v162_v42, %v102_v31 }
  0xab   :  { %v209_v45 = vrot.slane %v192_v43, 4 }
  0xad   :  { %v1815_v46 = vsel %vm212_vm1, %v163_v44, %v209_v45  ;;  %v1818_v47 = vsel %vm212_vm1, %v209_v45, %v163_v44 }
  0xae   :  { %v1427_v48 = vpop.eup %1426 }
  0xaf   :  { %287 = vrot.lane.b32.xlu0 %v1427_v48, %s1693_s4 }
  0xb0   :  { %v194_v49 = vpop.f32.mrf.mxu1  ;;  %v165_v50 = vpop.f32.mrf.mxu0 }
  0xb1   :  { %v195_v51 = vadd.f32 %v194_v49, %v103_v30  ;;  %v166_v52 = vadd.f32 %v165_v50, %v102_v31 }
  0xb3   :  { %v210_v53 = vrot.slane %v195_v51, 4 }
  0xb5   :  { %v1822_v54 = vsel %vm212_vm1, %v210_v53, %v166_v52  ;;  %v1825_v55 = vsel %vm212_vm1, %v166_v52, %v210_v53 }
  0xb8   :  { %v197_v56 = vpop.f32.mrf.mxu1  ;;  %v168_v57 = vpop.f32.mrf.mxu0 }
  0xb9   :  { %v198_v58 = vadd.f32 %v197_v56, %v103_v30  ;;  %v169_v59 = vadd.f32 %v168_v57, %v102_v31 }
  0xbb   :  { %v211_v60 = vrot.slane %v198_v58, 4 }
  0xbd   :  { %v1828_v61 = vsel %vm212_vm1, %v211_v60, %v169_v59  ;;  %v1831_v62 = vsel %vm212_vm1, %v169_v59, %v211_v60 }
  0xbe   :  { %v224_v63 = vrot.slane %v1828_v61, 4 }
  0xc0   :  { %v302_v3 = vrot.slane %v224_v63, 4 }
  0xc2   :  { %v324_v4 = vadd.f32 %v321_v1, %v302_v3 }
  0xc4   :  { %1428 = vtanh.f32 %v324_v4  ;;  %v1384_v13 = vmul.f32 -1.442695, %v324_v4 }
  0xc5   :  { %1430 = vpow2.f32 %v1383_v7 }
  0xca   :  { %v1429_v6 = vpop.eup %1428 }
  0xcb   :  { %347 = vrot.lane.b32.xlu0 %v1429_v6, %s1693_s4  ;;  %v1431_v9 = vpop.eup %1430  ;;  %v215_v6 = vrot.slane %v1811_v39, 4 }
  0xcc   :  { %v268_v10 = vadd.f32 1.0, %v1431_v9 }
  0xce   :  { %1432 = vrcp.f32 %v268_v10  ;;  %v280_v20 = vand.u32 2147483648, %v268_v10  ;;  %vm274_vm3 = vweird.f32 %v268_v10  ;;  %v278_v21 = vand.u32 2147483647, %v268_v10 }
  0xcf   :  { %1434 = vpow2.f32 %v1384_v13 }
  0xd0   :  { %v281_v26 = vor.u32 1.1754944e-38, %v280_v20  ;;  %vm279_vm5 = vcmp.eq.f32.partialorder %v278_v21, 8.507059e+37 }
  0xd4   :  { %v1433_v11 = vpop.eup %1432 }
  0xd5   :  { %v270_v12 = vmul.f32 %v1433_v11, %v268_v10  ;;  %v1435_v17 = vpop.eup %1434  ;;  %vm275_vm2 = vweird.f32 %v1433_v11 }
  0xd6   :  { %v328_v22 = vadd.f32 1.0, %v1435_v17  ;;  %vm276_vm4 = vmor %vm274_vm3, %vm275_vm2 }
  0xd7   :  { %v271_v15 = vsub.f32 1.0, %v270_v12 }
  0xd8   :  { %1436 = vrcp.f32 %v328_v22  ;;  %v340_v35 = vand.u32 2147483648, %v328_v22  ;;  %vm334_vm7 = vweird.f32 %v328_v22  ;;  %v338_v36 = vand.u32 2147483647, %v328_v22 }
  0xd9   :  { %v272_v16 = vmul.f32 %v1433_v11, %v271_v15 }
  0xda   :  { %v341_v40 = vor.u32 1.1754944e-38, %v340_v35  ;;  %vm339_vm9 = vcmp.eq.f32.partialorder %v338_v36, 8.507059e+37 }
  0xdb   :  { %v273_v18 = vadd.f32 %v1433_v11, %v272_v16 }
  0xdd   :  { %v277_v25 = vsel %vm276_vm4, %v1433_v11, %v273_v18  ;;  %v427_v11 = vrot.slane %v1831_v62, 4 }
  0xde   :  { %v282_v28 = vsel %vm279_vm5, %v281_v26, %v277_v25  ;;  %v1437_v30 = vpop.eup %1436 }
  0xdf   :  { %v330_v31 = vmul.f32 %v1437_v30, %v328_v22  ;;  %vm335_vm6 = vweird.f32 %v1437_v30  ;;  %v285_v44 = vmul.f32 0.0, %v282_v28 }
  0xe0   :  { %vm336_vm8 = vmor %vm334_vm7, %vm335_vm6 }
  0xe1   :  { %v331_v32 = vsub.f32 1.0, %v330_v31 }
  0xe3   :  { %v332_v33 = vmul.f32 %v1437_v30, %v331_v32 }
  0xe5   :  { %v333_v34 = vadd.f32 %v1437_v30, %v332_v33 }
  0xe7   :  { %v337_v37 = vsel %vm336_vm8, %v1437_v30, %v333_v34 }
  0xe8   :  { %v342_v41 = vsel %vm339_vm9, %v341_v40, %v337_v37 }
  0xe9   :  { %v345_v50 = vmul.f32 0.0, %v342_v41 }
 0x121   :  { %v288_v27 = vpop.permute.xlu0 %287 }
 0x122   :  { %v290_v29 = vmul.f32 %v288_v27, %v282_v28 }
 0x124   :  { %292 = vrot.lane.b32.xlu1 %v290_v29, %s1693_s4 }
 0x13d   :  { %v348_v42 = vpop.permute.xlu0 %347 }
 0x13e   :  { %v350_v43 = vmul.f32 %v348_v42, %v342_v41 }
 0x140   :  { %352 = vrot.lane.b32.xlu1 %v350_v43, %s1693_s4 }
 0x196   :  { %v293_v45 = vpop.permute.xlu1 %292 }
 0x197   :  { %v1839_v48 = vadd.f32 %v293_v45, %v285_v44 }
 0x199   :  { %1438 = vtanh.f32 %v1839_v48 }
 0x19f   :  { %v1439_v49 = vpop.eup %1438 }
 0x1a0   :  { %298 = vrot.lane.b32.xlu2 %v1439_v49, %s1693_s4 }
 0x1b2   :  { %v353_v51 = vpop.permute.xlu1 %352 }
 0x1b3   :  { %v1843_v52 = vadd.f32 %v353_v51, %v345_v50 }
 0x1b5   :  { %1440 = vtanh.f32 %v1843_v52 }
 0x1bb   :  { %v1441_v53 = vpop.eup %1440 }
 0x1bc   :  { %358 = vrot.lane.b32.xlu2 %v1441_v53, %s1693_s4 }
 0x1fa   :  { %v299_v56 = vpop.permute.xlu2 %298 }
 0x1fb   :  { %v1847_v57 = vmul.f32 %v299_v56, %v282_v28 }
 0x1fd   :  { %363 = vst [vmem:[#allocation1] ss:$2 sm:$0xff] %v1847_v57 }
 0x204   :  { %v364_v58 = vld.sshfl [vmem:[#allocation1] sm:$0xff pattern:$0x75316420] }
 0x205   :  { %365 = vrot.lane.b32.xlu0 %v364_v58, %s1686_s30 }
 0x216   :  { %v359_v59 = vpop.permute.xlu2 %358 }
 0x217   :  { %v1851_v60 = vmul.f32 %v359_v59, %v342_v41 }
 0x219   :  { %430 = vst [vmem:[#allocation1] ss:$2 sm:$0xff] %v1851_v60 }
 0x220   :  { %v431_v1 = vld.sshfl [vmem:[#allocation1] sm:$0xff pattern:$0x75316420] }
 0x221   :  { %432 = vrot.lane.b32.xlu1 %v431_v1, %s1686_s30 }
 0x277   :  { %v366_v3 = vpop.permute.xlu0 %365 }
 0x278   :  { %1385 = vmatmul.msk.f32.vlgmr.msrb.gmra.mxu2 %vm133_vm0, %v366_v3 }
 0x279   :  { %645 = vmatpush.msrb.mxu2 %v1740_v0 }
 0x27b   :  { %646 = vmatpush.msrb.mxu2 %v1742_v2 }
 0x27d   :  { %647 = vmatpush.msrb.mxu2 %v1745_v5 }
 0x27f   :  { %648 = vmatpush.msrb.mxu2 %v1747_v8 }
 0x293   :  { %v433_v4 = vpop.permute.xlu1 %432 }
 0x294   :  { %1387 = vmatmul.msk.f32.vlgmr.msrb.gmra.mxu3 %vm133_vm0, %v433_v4 }
 0x295   :  { %712 = vmatpush.msrb.mxu3 %v1750_v14 }
 0x297   :  { %713 = vmatpush.msrb.mxu3 %v1755_v19 }
 0x299   :  { %714 = vmatpush.msrb.mxu3 %v1757_v23 }
 0x29b   :  { %715 = vmatpush.msrb.mxu3 %v1764_v24 }
 0x2fb   :  { %v386_v7 = vpop.f32.mrf.mxu2 }
 0x2fc   :  { %v389_v9 = vadd.f32 %v386_v7, %v215_v6 }
 0x2fe   :  { %1442 = vtanh.f32 %v389_v9  ;;  %v1386_v16 = vmul.f32 -1.442695, %v389_v9 }
 0x304   :  { %v1443_v10 = vpop.eup %1442 }
 0x305   :  { %412 = vrot.lane.b32.xlu2 %v1443_v10, %s1693_s4 }
 0x317   :  { %v453_v12 = vpop.f32.mrf.mxu3 }
 0x318   :  { %v456_v13 = vadd.f32 %v453_v12, %v427_v11 }
 0x31a   :  { %1444 = vtanh.f32 %v456_v13  ;;  %v1388_v34 = vmul.f32 -1.442695, %v456_v13 }
 0x31b   :  { %1446 = vpow2.f32 %v1386_v16 }
 0x320   :  { %v1445_v15 = vpop.eup %1444 }
 0x321   :  { %479 = vrot.lane.b32.xlu0 %v1445_v15, %s1693_s4  ;;  %v1447_v17 = vpop.eup %1446 }
 0x322   :  { %v393_v18 = vadd.f32 1.0, %v1447_v17 }
 0x324   :  { %1448 = vrcp.f32 %v393_v18  ;;  %v405_v27 = vand.u32 2147483648, %v393_v18  ;;  %vm399_vm11 = vweird.f32 %v393_v18  ;;  %v403_v28 = vand.u32 2147483647, %v393_v18 }
 0x325   :  { %1450 = vpow2.f32 %v1388_v34 }
 0x326   :  { %v406_v30 = vor.u32 1.1754944e-38, %v405_v27  ;;  %vm404_vm13 = vcmp.eq.f32.partialorder %v403_v28, 8.507059e+37 }
 0x32a   :  { %v1449_v20 = vpop.eup %1448 }
 0x32b   :  { %v395_v21 = vmul.f32 %v1449_v20, %v393_v18  ;;  %vm400_vm10 = vweird.f32 %v1449_v20  ;;  %v1451_v35 = vpop.eup %1450 }
 0x32c   :  { %vm401_vm12 = vmor %vm399_vm11, %vm400_vm10  ;;  %v460_v36 = vadd.f32 1.0, %v1451_v35 }
 0x32d   :  { %v396_v22 = vsub.f32 1.0, %v395_v21 }
 0x32e   :  { %1452 = vrcp.f32 %v460_v36  ;;  %v472_v44 = vand.u32 2147483648, %v460_v36  ;;  %vm466_vm15 = vweird.f32 %v460_v36  ;;  %v470_v45 = vand.u32 2147483647, %v460_v36 }
 0x32f   :  { %v397_v25 = vmul.f32 %v1449_v20, %v396_v22  ;;  %v221_v22 = vrot.slane %v1822_v54, 4 }
 0x330   :  { %v473_v50 = vor.u32 1.1754944e-38, %v472_v44  ;;  %vm471_vm2 = vcmp.eq.f32.partialorder %v470_v45, 8.507059e+37 }
 0x331   :  { %v398_v26 = vadd.f32 %v1449_v20, %v397_v25  ;;  %v559_v25 = vrot.slane %v221_v22, 4 }
 0x333   :  { %v402_v29 = vsel %vm401_vm12, %v1449_v20, %v398_v26 }
 0x334   :  { %v407_v31 = vsel %vm404_vm13, %v406_v30, %v402_v29  ;;  %v1453_v37 = vpop.eup %1452 }
 0x335   :  { %v462_v40 = vmul.f32 %v1453_v37, %v460_v36  ;;  %vm467_vm14 = vweird.f32 %v1453_v37  ;;  %v410_v58 = vmul.f32 %v407_v31, %v1839_v48 }
 0x336   :  { %vm468_vm1 = vmor %vm466_vm15, %vm467_vm14 }
 0x337   :  { %v463_v41 = vsub.f32 1.0, %v462_v40 }
 0x339   :  { %v464_v42 = vmul.f32 %v1453_v37, %v463_v41 }
 0x33b   :  { %v465_v43 = vadd.f32 %v1453_v37, %v464_v42 }
 0x33d   :  { %v469_v49 = vsel %vm468_vm1, %v1453_v37, %v465_v43 }
 0x33e   :  { %v474_v53 = vsel %vm471_vm2, %v473_v50, %v469_v49 }
 0x33f   :  { %v477_v4 = vmul.f32 %v474_v53, %v1843_v52 }
 0x35f   :  { %v413_v32 = vpop.permute.xlu2 %412 }
 0x360   :  { %v415_v33 = vmul.f32 %v413_v32, %v407_v31 }
 0x362   :  { %417 = vrot.lane.b32.xlu1 %v415_v33, %s1693_s4 }
 0x393   :  { %v480_v51 = vpop.permute.xlu0 %479 }
 0x394   :  { %v482_v56 = vmul.f32 %v480_v51, %v474_v53 }
 0x396   :  { %484 = vrot.lane.b32.xlu2 %v482_v56, %s1693_s4 }
 0x3d4   :  { %v418_v59 = vpop.permute.xlu1 %417 }
 0x3d5   :  { %v1874_v1 = vadd.f32 %v418_v59, %v410_v58 }
 0x3d7   :  { %1454 = vtanh.f32 %v1874_v1 }
 0x3dd   :  { %v1455_v3 = vpop.eup %1454 }
 0x3de   :  { %423 = vrot.lane.b32.xlu0 %v1455_v3, %s1693_s4 }
 0x3f0   :  { %v485_v7 = vpop.permute.xlu2 %484 }
 0x3f1   :  { %v1879_v9 = vadd.f32 %v485_v7, %v477_v4 }
 0x3f3   :  { %1456 = vtanh.f32 %v1879_v9 }
 0x3f9   :  { %v1457_v10 = vpop.eup %1456 }
 0x3fa   :  { %490 = vrot.lane.b32.xlu1 %v1457_v10, %s1693_s4 }
 0x450   :  { %v424_v11 = vpop.permute.xlu0 %423 }
 0x451   :  { %v1883_v48 = vmul.f32 %v424_v11, %v407_v31 }
 0x453   :  { %495 = vst [vmem:[#allocation1] ss:$2 sm:$0xff] %v1883_v48 }
 0x45a   :  { %v496_v12 = vld.sshfl [vmem:[#allocation1] sm:$0xff pattern:$0x75316420] }
 0x45b   :  { %497 = vrot.lane.b32.xlu2 %v496_v12, %s1686_s30 }
 0x46c   :  { %v491_v13 = vpop.permute.xlu1 %490 }
 0x46d   :  { %v1887_v15 = vmul.f32 %v491_v13, %v474_v53 }
 0x46f   :  { %562 = vst [vmem:[#allocation1] ss:$2 sm:$0xff] %v1887_v15 }
 0x476   :  { %v563_v52 = vld.sshfl [vmem:[#allocation1] sm:$0xff pattern:$0x75316420] }
 0x477   :  { %564 = vrot.lane.b32.xlu0 %v563_v52, %s1686_s30 }
 0x4b5   :  { %v498_v16 = vpop.permute.xlu2 %497 }
 0x4b6   :  { %1389 = vmatmul.msk.f32.vlgmr.msra.gmra.mxu2 %vm133_vm0, %v498_v16 }
 0x4b7   :  { %909 = vmatpush.msra.mxu2 %v1740_v0 }
 0x4b9   :  { %910 = vmatpush.msra.mxu2 %v1742_v2 }
 0x4bb   :  { %911 = vmatpush.msra.mxu2 %v1745_v5 }
 0x4bd   :  { %912 = vmatpush.msra.mxu2 %v1747_v8 }
 0x4e9   :  { %v565_v17 = vpop.permute.xlu0 %564 }
 0x4ea   :  { %1391 = vmatmul.msk.f32.vlgmr.msra.gmra.mxu3 %vm133_vm0, %v565_v17 }
 0x4eb   :  { %976 = vmatpush.msra.mxu3 %v1750_v14 }
 0x4ed   :  { %977 = vmatpush.msra.mxu3 %v1755_v19 }
 0x4ef   :  { %978 = vmatpush.msra.mxu3 %v1757_v23 }
 0x4f1   :  { %979 = vmatpush.msra.mxu3 %v1764_v24 }
 0x539   :  { %v518_v18 = vpop.f32.mrf.mxu2 }
 0x53a   :  { %v521_v20 = vadd.f32 %v518_v18, %v1815_v46 }
 0x53c   :  { %1458 = vtanh.f32 %v521_v20  ;;  %v1390_v29 = vmul.f32 -1.442695, %v521_v20 }
 0x542   :  { %v1459_v21 = vpop.eup %1458 }
 0x543   :  { %544 = vrot.lane.b32.xlu1 %v1459_v21, %s1693_s4 }
 0x56d   :  { %v585_v26 = vpop.f32.mrf.mxu3 }
 0x56e   :  { %v588_v27 = vadd.f32 %v585_v26, %v559_v25 }
 0x570   :  { %1460 = vtanh.f32 %v588_v27  ;;  %v1392_v34 = vmul.f32 -1.442695, %v588_v27 }
 0x571   :  { %1462 = vpow2.f32 %v1390_v29 }
 0x576   :  { %v1461_v28 = vpop.eup %1460 }
 0x577   :  { %611 = vrot.lane.b32.xlu2 %v1461_v28, %s1693_s4  ;;  %v1463_v30 = vpop.eup %1462 }
 0x578   :  { %v525_v31 = vadd.f32 1.0, %v1463_v30 }
 0x57a   :  { %1464 = vrcp.f32 %v525_v31  ;;  %v537_v41 = vand.u32 2147483648, %v525_v31  ;;  %vm531_vm4 = vweird.f32 %v525_v31  ;;  %v535_v42 = vand.u32 2147483647, %v525_v31 }
 0x57b   :  { %1466 = vpow2.f32 %v1392_v34  ;;  %v218_v34 = vrot.slane %v1818_v47, 4 }
 0x57c   :  { %v538_v45 = vor.u32 1.1754944e-38, %v537_v41  ;;  %vm536_vm6 = vcmp.eq.f32.partialorder %v535_v42, 8.507059e+37 }
 0x580   :  { %v1465_v32 = vpop.eup %1464 }
 0x581   :  { %v527_v33 = vmul.f32 %v1465_v32, %v525_v31  ;;  %v1467_v37 = vpop.eup %1466  ;;  %vm532_vm3 = vweird.f32 %v1465_v32 }
 0x582   :  { %v592_v43 = vadd.f32 1.0, %v1467_v37  ;;  %vm533_vm5 = vmor %vm531_vm4, %vm532_vm3 }
 0x583   :  { %v528_v35 = vsub.f32 1.0, %v527_v33 }
 0x584   :  { %1468 = vrcp.f32 %v592_v43  ;;  %v604_v4 = vand.u32 2147483648, %v592_v43  ;;  %vm598_vm8 = vweird.f32 %v592_v43  ;;  %v602_v7 = vand.u32 2147483647, %v592_v43 }
 0x585   :  { %v529_v36 = vmul.f32 %v1465_v32, %v528_v35 }
 0x586   :  { %v605_v11 = vor.u32 1.1754944e-38, %v604_v4  ;;  %vm603_vm10 = vcmp.eq.f32.partialorder %v602_v7, 8.507059e+37 }
 0x587   :  { %v530_v40 = vadd.f32 %v1465_v32, %v529_v36 }
 0x589   :  { %v534_v44 = vsel %vm533_vm5, %v1465_v32, %v530_v40 }
 0x58a   :  { %v539_v50 = vsel %vm536_vm6, %v538_v45, %v534_v44  ;;  %v1469_v53 = vpop.eup %1468 }
 0x58b   :  { %v594_v56 = vmul.f32 %v1469_v53, %v592_v43  ;;  %vm599_vm7 = vweird.f32 %v1469_v53  ;;  %v542_v16 = vmul.f32 %v539_v50, %v1874_v1 }
 0x58c   :  { %vm600_vm9 = vmor %vm598_vm8, %vm599_vm7 }
 0x58d   :  { %v595_v58 = vsub.f32 1.0, %v594_v56 }
 0x58f   :  { %v596_v59 = vmul.f32 %v1469_v53, %v595_v58 }
 0x591   :  { %v597_v3 = vadd.f32 %v1469_v53, %v596_v59 }
 0x593   :  { %v601_v10 = vsel %vm600_vm9, %v1469_v53, %v597_v3 }
 0x594   :  { %v606_v12 = vsel %vm603_vm10, %v605_v11, %v601_v10 }
 0x595   :  { %v609_v21 = vmul.f32 %v606_v12, %v1879_v9 }
 0x5b5   :  { %v545_v49 = vpop.permute.xlu1 %544 }
 0x5b6   :  { %v547_v51 = vmul.f32 %v545_v49, %v539_v50 }
 0x5b8   :  { %549 = vrot.lane.b32.xlu0 %v547_v51, %s1693_s4 }
 0x5d1   :  { %v612_v13 = vpop.permute.xlu2 %611 }
 0x5d2   :  { %v614_v52 = vmul.f32 %v612_v13, %v606_v12 }
 0x5d4   :  { %616 = vrot.lane.b32.xlu1 %v614_v52, %s1693_s4 }
 0x62a   :  { %v550_v17 = vpop.permute.xlu0 %549 }
 0x62b   :  { %v1910_v18 = vadd.f32 %v550_v17, %v542_v16 }
 0x62d   :  { %1470 = vtanh.f32 %v1910_v18 }
 0x633   :  { %v1471_v20 = vpop.eup %1470 }
 0x634   :  { %555 = vrot.lane.b32.xlu2 %v1471_v20, %s1693_s4 }
 0x646   :  { %v617_v25 = vpop.permute.xlu1 %616 }
 0x647   :  { %v1915_v26 = vadd.f32 %v617_v25, %v609_v21 }
 0x649   :  { %1472 = vtanh.f32 %v1915_v26 }
 0x64f   :  { %v1473_v27 = vpop.eup %1472 }
 0x650   :  { %622 = vrot.lane.b32.xlu0 %v1473_v27, %s1693_s4 }
 0x68e   :  { %v556_v28 = vpop.permute.xlu2 %555 }
 0x68f   :  { %v1919_v1 = vmul.f32 %v556_v28, %v539_v50 }
 0x691   :  { %627 = vst [vmem:[#allocation1] ss:$2 sm:$0xff] %v1919_v1 }
 0x698   :  { %v628_v29 = vld.sshfl [vmem:[#allocation1] sm:$0xff pattern:$0x75316420] }
 0x699   :  { %629 = vrot.lane.b32.xlu1 %v628_v29, %s1686_s30 }
 0x6c2   :  { %v623_v30 = vpop.permute.xlu0 %622 }
 0x6c3   :  { %v1923_v31 = vmul.f32 %v623_v30, %v606_v12 }
 0x6c5   :  { %694 = vst [vmem:[#allocation1] ss:$2 sm:$0xff] %v1923_v31 }
 0x6cc   :  { %v695_v9 = vld.sshfl [vmem:[#allocation1] sm:$0xff pattern:$0x75316420] }
 0x6cd   :  { %696 = vrot.lane.b32.xlu2 %v695_v9, %s1686_s30 }
 0x70b   :  { %v630_v32 = vpop.permute.xlu1 %629 }
 0x70c   :  { %1393 = vmatmul.msk.f32.vlgmr.msrb.gmra.mxu2 %vm133_vm0, %v630_v32 }
 0x70d   :  { %1173 = vmatpush.msrb.mxu2 %v1740_v0 }
 0x70f   :  { %1174 = vmatpush.msrb.mxu2 %v1742_v2 }
 0x711   :  { %1175 = vmatpush.msrb.mxu2 %v1745_v5 }
 0x713   :  { %1176 = vmatpush.msrb.mxu2 %v1747_v8  ;;  %v691_v8 = vrot.slane %v1825_v55, 4 }
 0x727   :  { %v697_v33 = vpop.permute.xlu2 %696 }
 0x728   :  { %1395 = vmatmul.msk.f32.vlgmr.msrb.gmra.mxu3 %vm133_vm0, %v697_v33 }
 0x729   :  { %1240 = vmatpush.msrb.mxu3 %v1750_v14 }
 0x72b   :  { %1241 = vmatpush.msrb.mxu3 %v1755_v19 }
 0x72d   :  { %1242 = vmatpush.msrb.mxu3 %v1757_v23 }
 0x72f   :  { %1243 = vmatpush.msrb.mxu3 %v1764_v24 }
 0x78f   :  { %v650_v0 = vpop.f32.mrf.mxu2 }
 0x790   :  { %v653_v2 = vadd.f32 %v650_v0, %v218_v34 }
 0x792   :  { %1474 = vtanh.f32 %v653_v2  ;;  %v1394_v23 = vmul.f32 -1.442695, %v653_v2 }
 0x798   :  { %v1475_v5 = vpop.eup %1474 }
 0x799   :  { %676 = vrot.lane.b32.xlu0 %v1475_v5, %s1693_s4 }
 0x7ab   :  { %v717_v35 = vpop.f32.mrf.mxu3 }
 0x7ac   :  { %v720_v14 = vadd.f32 %v717_v35, %v691_v8 }
 0x7ae   :  { %1476 = vtanh.f32 %v720_v14  ;;  %v1396_v41 = vmul.f32 -1.442695, %v720_v14 }
 0x7af   :  { %1478 = vpow2.f32 %v1394_v23 }
 0x7b4   :  { %v1477_v19 = vpop.eup %1476 }
 0x7b5   :  { %743 = vrot.lane.b32.xlu1 %v1477_v19, %s1693_s4  ;;  %v1479_v24 = vpop.eup %1478 }
 0x7b6   :  { %v657_v36 = vadd.f32 1.0, %v1479_v24 }
 0x7b8   :  { %1480 = vrcp.f32 %v657_v36  ;;  %v669_v49 = vand.u32 2147483648, %v657_v36  ;;  %vm663_vm12 = vweird.f32 %v657_v36  ;;  %v667_v50 = vand.u32 2147483647, %v657_v36 }
 0x7b9   :  { %1482 = vpow2.f32 %v1396_v41 }
 0x7ba   :  { %v670_v56 = vor.u32 1.1754944e-38, %v669_v49  ;;  %vm668_vm14 = vcmp.eq.f32.partialorder %v667_v50, 8.507059e+37 }
 0x7be   :  { %v1481_v37 = vpop.eup %1480 }
 0x7bf   :  { %v659_v40 = vmul.f32 %v1481_v37, %v657_v36  ;;  %v1483_v44 = vpop.eup %1482  ;;  %vm664_vm11 = vweird.f32 %v1481_v37 }
 0x7c0   :  { %v724_v51 = vadd.f32 1.0, %v1483_v44  ;;  %vm665_vm13 = vmor %vm663_vm12, %vm664_vm11 }
 0x7c1   :  { %v660_v42 = vsub.f32 1.0, %v659_v40 }
 0x7c2   :  { %1484 = vrcp.f32 %v724_v51  ;;  %v736_v13 = vand.u32 2147483648, %v724_v51  ;;  %vm730_vm1 = vweird.f32 %v724_v51  ;;  %v734_v52 = vand.u32 2147483647, %v724_v51 }
 0x7c3   :  { %v661_v43 = vmul.f32 %v1481_v37, %v660_v42 }
 0x7c4   :  { %v737_v17 = vor.u32 1.1754944e-38, %v736_v13  ;;  %vm735_vm3 = vcmp.eq.f32.partialorder %v734_v52, 8.507059e+37 }
 0x7c5   :  { %v662_v45 = vadd.f32 %v1481_v37, %v661_v43 }
 0x7c7   :  { %v666_v53 = vsel %vm665_vm13, %v1481_v37, %v662_v45  ;;  %v823_v37 = vrot.slane %v218_v34, 4 }
 0x7c8   :  { %v671_v59 = vsel %vm668_vm14, %v670_v56, %v666_v53  ;;  %v1485_v4 = vpop.eup %1484 }
 0x7c9   :  { %v726_v7 = vmul.f32 %v1485_v4, %v724_v51  ;;  %vm731_vm15 = vweird.f32 %v1485_v4  ;;  %v674_v27 = vmul.f32 %v671_v59, %v1910_v18 }
 0x7ca   :  { %vm732_vm2 = vmor %vm730_vm1, %vm731_vm15 }
 0x7cb   :  { %v727_v10 = vsub.f32 1.0, %v726_v7 }
 0x7cd   :  { %v728_v11 = vmul.f32 %v1485_v4, %v727_v10 }
 0x7cf   :  { %v729_v12 = vadd.f32 %v1485_v4, %v728_v11 }
 0x7d1   :  { %v733_v16 = vsel %vm732_vm2, %v1485_v4, %v729_v12 }
 0x7d2   :  { %v738_v21 = vsel %vm735_vm3, %v737_v17, %v733_v16 }
 0x7d3   :  { %v741_v9 = vmul.f32 %v738_v21, %v1915_v26 }
 0x80b   :  { %v677_v58 = vpop.permute.xlu0 %676 }
 0x80c   :  { %v679_v3 = vmul.f32 %v677_v58, %v671_v59 }
 0x80e   :  { %681 = vrot.lane.b32.xlu2 %v679_v3, %s1693_s4 }
 0x827   :  { %v744_v20 = vpop.permute.xlu1 %743 }
 0x828   :  { %v746_v25 = vmul.f32 %v744_v20, %v738_v21 }
 0x82a   :  { %748 = vrot.lane.b32.xlu0 %v746_v25, %s1693_s4 }
 0x868   :  { %v682_v28 = vpop.permute.xlu2 %681 }
 0x869   :  { %v1946_v29 = vadd.f32 %v682_v28, %v674_v27 }
 0x86b   :  { %1486 = vtanh.f32 %v1946_v29 }
 0x871   :  { %v1487_v30 = vpop.eup %1486 }
 0x872   :  { %687 = vrot.lane.b32.xlu1 %v1487_v30, %s1693_s4 }
 0x89c   :  { %v749_v32 = vpop.permute.xlu0 %748 }
 0x89d   :  { %v1951_v33 = vadd.f32 %v749_v32, %v741_v9 }
 0x89f   :  { %1488 = vtanh.f32 %v1951_v33 }
 0x8a5   :  { %v1489_v0 = vpop.eup %1488 }
 0x8a6   :  { %754 = vrot.lane.b32.xlu2 %v1489_v0, %s1693_s4 }
 0x8e4   :  { %v688_v2 = vpop.permute.xlu1 %687 }
 0x8e5   :  { %v1955_v18 = vmul.f32 %v688_v2, %v671_v59 }
 0x8e7   :  { %759 = vst [vmem:[#allocation1] ss:$2 sm:$0xff] %v1955_v18 }
 0x8ee   :  { %v760_v5 = vld.sshfl [vmem:[#allocation1] sm:$0xff pattern:$0x75316420] }
 0x8ef   :  { %761 = vrot.lane.b32.xlu0 %v760_v5, %s1686_s30 }
 0x900   :  { %v755_v8 = vpop.permute.xlu2 %754 }
 0x901   :  { %v1959_v35 = vmul.f32 %v755_v8, %v738_v21 }
 0x903   :  { %826 = vst [vmem:[#allocation1] ss:$2 sm:$0xff] %v1959_v35 }
 0x90a   :  { %v827_v26 = vld.sshfl [vmem:[#allocation1] sm:$0xff pattern:$0x75316420] }
 0x90b   :  { %828 = vrot.lane.b32.xlu1 %v827_v26, %s1686_s30 }
 0x961   :  { %v762_v14 = vpop.permute.xlu0 %761 }
 0x962   :  { %1397 = vmatmul.msk.f32.vlgmr.msrb.gmra.mxu0 %vm133_vm0, %v762_v14 }
 0x97d   :  { %v829_v19 = vpop.permute.xlu1 %828 }
 0x97e   :  { %1399 = vmatmul.msk.f32.vlgmr.msrb.gmra.mxu1 %vm133_vm0, %v829_v19 }
 0x9df   :  { %v782_v23 = vpop.f32.mrf.mxu0 }
 0x9e0   :  { %v785_v24 = vadd.f32 %v782_v23, %v1825_v55 }
 0x9e2   :  { %1490 = vtanh.f32 %v785_v24  ;;  %v1398_v43 = vmul.f32 -1.442695, %v785_v24 }
 0x9e8   :  { %v1491_v36 = vpop.eup %1490 }
 0x9e9   :  { %808 = vrot.lane.b32.xlu2 %v1491_v36, %s1693_s4 }
 0x9fb   :  { %v849_v40 = vpop.f32.mrf.mxu1 }
 0x9fc   :  { %v852_v41 = vadd.f32 %v849_v40, %v823_v37 }
 0x9fe   :  { %1492 = vtanh.f32 %v852_v41  ;;  %v1400_v7 = vmul.f32 -1.442695, %v852_v41 }
 0x9ff   :  { %1494 = vpow2.f32 %v1398_v43 }
 0xa04   :  { %v1493_v42 = vpop.eup %1492 }
 0xa05   :  { %875 = vrot.lane.b32.xlu0 %v1493_v42, %s1693_s4  ;;  %v1495_v44 = vpop.eup %1494 }
 0xa06   :  { %v789_v45 = vadd.f32 1.0, %v1495_v44 }
 0xa08   :  { %1496 = vrcp.f32 %v789_v45  ;;  %v801_v56 = vand.u32 2147483648, %v789_v45  ;;  %vm795_vm5 = vweird.f32 %v789_v45  ;;  %v799_v47 = vand.u32 2147483647, %v789_v45 }
 0xa09   :  { %1498 = vpow2.f32 %v1400_v7 }
 0xa0a   :  { %v802_v58 = vor.u32 1.1754944e-38, %v801_v56  ;;  %vm800_vm7 = vcmp.eq.f32.partialorder %v799_v47, 8.507059e+37 }
 0xa0e   :  { %v1497_v49 = vpop.eup %1496 }
 0xa0f   :  { %v791_v55 = vmul.f32 %v1497_v49, %v789_v45  ;;  %vm796_vm4 = vweird.f32 %v1497_v49  ;;  %v1499_v10 = vpop.eup %1498 }
 0xa10   :  { %vm797_vm6 = vmor %vm795_vm5, %vm796_vm4  ;;  %v856_v11 = vadd.f32 1.0, %v1499_v10 }
 0xa11   :  { %v792_v50 = vsub.f32 1.0, %v791_v55 }
 0xa12   :  { %1500 = vrcp.f32 %v856_v11  ;;  %v868_v20 = vand.u32 2147483648, %v856_v11  ;;  %vm862_vm9 = vweird.f32 %v856_v11  ;;  %v866_v21 = vand.u32 2147483647, %v856_v11 }
 0xa13   :  { %v793_v51 = vmul.f32 %v1497_v49, %v792_v50 }
 0xa14   :  { %v869_v27 = vor.u32 1.1754944e-38, %v868_v20  ;;  %vm867_vm11 = vcmp.eq.f32.partialorder %v866_v21, 8.507059e+37 }
 0xa15   :  { %v794_v53 = vadd.f32 %v1497_v49, %v793_v51 }
 0xa17   :  { %v798_v34 = vsel %vm797_vm6, %v1497_v49, %v794_v53 }
 0xa18   :  { %v803_v59 = vsel %vm800_vm7, %v802_v58, %v798_v34  ;;  %v1501_v12 = vpop.eup %1500 }
 0xa19   :  { %v858_v13 = vmul.f32 %v1501_v12, %v856_v11  ;;  %vm863_vm8 = vweird.f32 %v1501_v12  ;;  %v806_v32 = vmul.f32 %v803_v59, %v1946_v29 }
 0xa1a   :  { %vm864_vm10 = vmor %vm862_vm9, %vm863_vm8 }
 0xa1b   :  { %v859_v52 = vsub.f32 1.0, %v858_v13 }
 0xa1d   :  { %v860_v16 = vmul.f32 %v1501_v12, %v859_v52 }
 0xa1f   :  { %v861_v17 = vadd.f32 %v1501_v12, %v860_v16 }
 0xa21   :  { %v865_v25 = vsel %vm864_vm10, %v1501_v12, %v861_v17 }
 0xa22   :  { %v870_v30 = vsel %vm867_vm11, %v869_v27, %v865_v25 }
 0xa23   :  { %v873_v8 = vmul.f32 %v870_v30, %v1951_v33 }
 0xa43   :  { %v809_v3 = vpop.permute.xlu2 %808 }
 0xa44   :  { %v811_v4 = vmul.f32 %v809_v3, %v803_v59 }
 0xa46   :  { %813 = vrot.lane.b32.xlu1 %v811_v4, %s1693_s4 }
 0xa77   :  { %v876_v28 = vpop.permute.xlu0 %875 }
 0xa78   :  { %v878_v9 = vmul.f32 %v876_v28, %v870_v30 }
 0xa7a   :  { %880 = vrot.lane.b32.xlu2 %v878_v9, %s1693_s4 }
 0xab8   :  { %v814_v0 = vpop.permute.xlu1 %813 }
 0xab9   :  { %v1973_v2 = vadd.f32 %v814_v0, %v806_v32 }
 0xabb   :  { %1502 = vtanh.f32 %v1973_v2 }
 0xac1   :  { %v1503_v5 = vpop.eup %1502 }
 0xac2   :  { %819 = vrot.lane.b32.xlu0 %v1503_v5, %s1693_s4 }
 0xad4   :  { %v881_v26 = vpop.permute.xlu2 %880 }
 0xad5   :  { %v1978_v14 = vadd.f32 %v881_v26, %v873_v8 }
 0xad7   :  { %1504 = vtanh.f32 %v1978_v14 }
 0xadd   :  { %v1505_v19 = vpop.eup %1504 }
 0xade   :  { %886 = vrot.lane.b32.xlu1 %v1505_v19, %s1693_s4 }
 0xb34   :  { %v820_v23 = vpop.permute.xlu0 %819 }
 0xb35   :  { %v1982_v29 = vmul.f32 %v820_v23, %v803_v59 }
 0xb37   :  { %891 = vst [vmem:[#allocation1] ss:$2 sm:$0xff] %v1982_v29 }
 0xb3e   :  { %v892_v24 = vld.sshfl [vmem:[#allocation1] sm:$0xff pattern:$0x75316420] }
 0xb3f   :  { %893 = vrot.lane.b32.xlu2 %v892_v24, %s1686_s30 }
 0xb50   :  { %v887_v36 = vpop.permute.xlu1 %886 }
 0xb51   :  { %v889_v37 = vmul.f32 %v887_v36, %v870_v30 }
 0xb53   :  { %v1289_v33 = vadd.f32 %v889_v37, %v1955_v18  ;;  %958 = vst [vmem:[#allocation1] ss:$2 sm:$0xff] %v889_v37  ;;  %v955_v18 = vrot.slane %v1815_v46, 4 }
 0xb55   :  { %1311 = vst [vmem:[#allocation1 + $0x30] ss:$2 sm:$0xff] %v1289_v33 }
 0xb5a   :  { %v959_v40 = vld.sshfl [vmem:[#allocation1] sm:$0xff pattern:$0x75316420] }
 0xb5b   :  { %960 = vrot.lane.b32.xlu0 %v959_v40, %s1686_s30 }
 0xb99   :  { %v894_v41 = vpop.permute.xlu2 %893 }
 0xb9a   :  { %1401 = vmatmul.msk.f32.vlgmr.msra.gmra.mxu2 %vm133_vm0, %v894_v41 }
 0xbcd   :  { %v961_v42 = vpop.permute.xlu0 %960 }
 0xbce   :  { %1403 = vmatmul.msk.f32.vlgmr.msra.gmra.mxu3 %vm133_vm0, %v961_v42 }
 0xc1d   :  { %v914_v43 = vpop.f32.mrf.mxu2 }
 0xc1e   :  { %v917_v44 = vadd.f32 %v914_v43, %v221_v22 }
 0xc20   :  { %1506 = vtanh.f32 %v917_v44  ;;  %v1402_v51 = vmul.f32 -1.442695, %v917_v44 }
 0xc26   :  { %v1507_v45 = vpop.eup %1506 }
 0xc27   :  { %940 = vrot.lane.b32.xlu1 %v1507_v45, %s1693_s4 }
 0xc51   :  { %v981_v49 = vpop.f32.mrf.mxu3 }
 0xc52   :  { %v984_v55 = vadd.f32 %v981_v49, %v955_v18 }
 0xc54   :  { %1508 = vtanh.f32 %v984_v55  ;;  %v1404_v22 = vmul.f32 -1.442695, %v984_v55 }
 0xc55   :  { %1510 = vpow2.f32 %v1402_v51 }
 0xc5a   :  { %v1509_v50 = vpop.eup %1508 }
 0xc5b   :  { %1007 = vrot.lane.b32.xlu2 %v1509_v50, %s1693_s4  ;;  %v1511_v53 = vpop.eup %1510 }
 0xc5c   :  { %v921_v56 = vadd.f32 1.0, %v1511_v53 }
 0xc5e   :  { %1512 = vrcp.f32 %v921_v56  ;;  %v933_v46 = vand.u32 2147483648, %v921_v56  ;;  %vm927_vm13 = vweird.f32 %v921_v56  ;;  %v931_v4 = vand.u32 2147483647, %v921_v56 }
 0xc5f   :  { %1514 = vpow2.f32 %v1404_v22 }
 0xc60   :  { %v934_v11 = vor.u32 1.1754944e-38, %v933_v46  ;;  %vm932_vm15 = vcmp.eq.f32.partialorder %v931_v4, 8.507059e+37 }
 0xc64   :  { %v1513_v47 = vpop.eup %1512 }
 0xc65   :  { %v923_v54 = vmul.f32 %v1513_v47, %v921_v56  ;;  %v1515_v59 = vpop.eup %1514  ;;  %vm928_vm12 = vweird.f32 %v1513_v47 }
 0xc66   :  { %v988_v7 = vadd.f32 1.0, %v1515_v59  ;;  %vm929_vm14 = vmor %vm927_vm13, %vm928_vm12 }
 0xc67   :  { %v924_v34 = vsub.f32 1.0, %v923_v54 }
 0xc68   :  { %1516 = vrcp.f32 %v988_v7  ;;  %v1000_v27 = vand.u32 2147483648, %v988_v7  ;;  %vm994_vm2 = vweird.f32 %v988_v7  ;;  %v998_v28 = vand.u32 2147483647, %v988_v7 }
 0xc69   :  { %v925_v58 = vmul.f32 %v1513_v47, %v924_v34 }
 0xc6a   :  { %v1001_v9 = vor.u32 1.1754944e-38, %v1000_v27  ;;  %vm999_vm4 = vcmp.eq.f32.partialorder %v998_v28, 8.507059e+37 }
 0xc6b   :  { %v926_v3 = vadd.f32 %v1513_v47, %v925_v58 }
 0xc6d   :  { %v930_v10 = vsel %vm929_vm14, %v1513_v47, %v926_v3 }
 0xc6e   :  { %v935_v13 = vsel %vm932_vm15, %v934_v11, %v930_v10  ;;  %v1517_v16 = vpop.eup %1516 }
 0xc6f   :  { %v990_v17 = vmul.f32 %v1517_v16, %v988_v7  ;;  %vm995_vm1 = vweird.f32 %v1517_v16  ;;  %v938_v8 = vmul.f32 %v935_v13, %v1973_v2 }
 0xc70   :  { %vm996_vm3 = vmor %vm994_vm2, %vm995_vm1 }
 0xc71   :  { %v991_v20 = vsub.f32 1.0, %v990_v17 }
 0xc73   :  { %v992_v21 = vmul.f32 %v1517_v16, %v991_v20 }
 0xc75   :  { %v993_v25 = vadd.f32 %v1517_v16, %v992_v21 }
 0xc77   :  { %v997_v30 = vsel %vm996_vm3, %v1517_v16, %v993_v25 }
 0xc78   :  { %v1002_v32 = vsel %vm999_vm4, %v1001_v9, %v997_v30 }
 0xc79   :  { %v1005_v24 = vmul.f32 %v1002_v32, %v1978_v14 }
 0xc99   :  { %v941_v12 = vpop.permute.xlu1 %940 }
 0xc9a   :  { %v943_v52 = vmul.f32 %v941_v12, %v935_v13 }
 0xc9c   :  { %945 = vrot.lane.b32.xlu0 %v943_v52, %s1693_s4 }
 0xcb5   :  { %v1008_v0 = vpop.permute.xlu2 %1007 }
 0xcb6   :  { %v1010_v5 = vmul.f32 %v1008_v0, %v1002_v32 }
 0xcb8   :  { %1012 = vrot.lane.b32.xlu1 %v1010_v5, %s1693_s4 }
 0xd0e   :  { %v946_v26 = vpop.permute.xlu0 %945 }
 0xd0f   :  { %v1998_v19 = vadd.f32 %v946_v26, %v938_v8 }
 0xd11   :  { %1518 = vtanh.f32 %v1998_v19 }
 0xd17   :  { %v1519_v23 = vpop.eup %1518 }
 0xd18   :  { %951 = vrot.lane.b32.xlu2 %v1519_v23, %s1693_s4 }
 0xd2a   :  { %v1013_v36 = vpop.permute.xlu1 %1012 }
 0xd2b   :  { %v2003_v37 = vadd.f32 %v1013_v36, %v1005_v24 }
 0xd2d   :  { %1520 = vtanh.f32 %v2003_v37 }
 0xd33   :  { %v1521_v33 = vpop.eup %1520 }
 0xd34   :  { %1018 = vrot.lane.b32.xlu0 %v1521_v33, %s1693_s4 }
 0xd72   :  { %v952_v40 = vpop.permute.xlu2 %951 }
 0xd73   :  { %v2007_v2 = vmul.f32 %v952_v40, %v935_v13 }
 0xd75   :  { %1023 = vst [vmem:[#allocation1] ss:$2 sm:$0xff] %v2007_v2 }
 0xd7c   :  { %v1024_v41 = vld.sshfl [vmem:[#allocation1] sm:$0xff pattern:$0x75316420] }
 0xd7d   :  { %1025 = vrot.lane.b32.xlu1 %v1024_v41, %s1686_s30 }
 0xda6   :  { %v1019_v42 = vpop.permute.xlu0 %1018 }
 0xda7   :  { %v1021_v43 = vmul.f32 %v1019_v42, %v1002_v32 }
 0xda9   :  { %v1288_v14 = vadd.f32 %v1021_v43, %v1919_v1  ;;  %1090 = vst [vmem:[#allocation1] ss:$2 sm:$0xff] %v1021_v43  ;;  %v1087_v1 = vrot.slane %v215_v6, 4 }
 0xdab   :  { %1308 = vst [vmem:[#allocation1 + $0x20] ss:$2 sm:$0xff] %v1288_v14 }
 0xdb0   :  { %v1091_v44 = vld.sshfl [vmem:[#allocation1] sm:$0xff pattern:$0x75316420] }
 0xdb1   :  { %1092 = vrot.lane.b32.xlu2 %v1091_v44, %s1686_s30 }
 0xdb2   :  { %v2033_v14 = vld.sshfl [vmem:[#allocation1 + $0x20] sm:$0xff pattern:$0x75316420] }
 0xdef   :  { %v1026_v45 = vpop.permute.xlu1 %1025 }
 0xdf0   :  { %1405 = vmatmul.msk.f32.vlgmr.msra.gmra.mxu0 %vm133_vm0, %v1026_v45 }
 0xe0b   :  { %v1093_v18 = vpop.permute.xlu2 %1092 }
 0xe0c   :  { %1407 = vmatmul.msk.f32.vlgmr.msra.gmra.mxu1 %vm133_vm0, %v1093_v18 }
 0xe6d   :  { %v1046_v49 = vpop.f32.mrf.mxu0 }
 0xe6e   :  { %v1049_v55 = vadd.f32 %v1046_v49, %v1831_v62 }
 0xe70   :  { %1522 = vtanh.f32 %v1049_v55  ;;  %v1406_v47 = vmul.f32 -1.442695, %v1049_v55  ;;  %v1291_v55 = vadd.f32 %v2007_v2, %v1923_v31  ;;  %v1219_v31 = vrot.slane %v1808_v38, 4 }
 0xe76   :  { %v1523_v50 = vpop.eup %1522 }
 0xe77   :  { %1072 = vrot.lane.b32.xlu0 %v1523_v50, %s1693_s4 }
 0xe89   :  { %v1113_v51 = vpop.f32.mrf.mxu1 }
 0xe8a   :  { %v1116_v53 = vadd.f32 %v1113_v51, %v1087_v1 }
 0xe8c   :  { %1524 = vtanh.f32 %v1116_v53  ;;  %v1408_v58 = vmul.f32 -1.442695, %v1116_v53 }
 0xe8d   :  { %1526 = vpow2.f32 %v1406_v47 }
 0xe92   :  { %v1525_v56 = vpop.eup %1524 }
 0xe93   :  { %1139 = vrot.lane.b32.xlu1 %v1525_v56, %s1693_s4  ;;  %v1527_v54 = vpop.eup %1526 }
 0xe94   :  { %v1053_v22 = vadd.f32 1.0, %v1527_v54 }
 0xe96   :  { %1528 = vrcp.f32 %v1053_v22  ;;  %v1065_v6 = vand.u32 2147483648, %v1053_v22  ;;  %vm1059_vm6 = vweird.f32 %v1053_v22  ;;  %v1063_v4 = vand.u32 2147483647, %v1053_v22 }
 0xe97   :  { %1530 = vpow2.f32 %v1408_v58 }
 0xe98   :  { %v1066_v11 = vor.u32 1.1754944e-38, %v1065_v6  ;;  %vm1064_vm8 = vcmp.eq.f32.partialorder %v1063_v4, 8.507059e+37 }
 0xe9c   :  { %v1529_v34 = vpop.eup %1528 }
 0xe9d   :  { %v1055_v62 = vmul.f32 %v1529_v34, %v1053_v22  ;;  %v1531_v46 = vpop.eup %1530  ;;  %vm1060_vm5 = vweird.f32 %v1529_v34 }
 0xe9e   :  { %v1120_v7 = vadd.f32 1.0, %v1531_v46  ;;  %vm1061_vm7 = vmor %vm1059_vm6, %vm1060_vm5  ;;  %vm1345_vm5 = vcmask 257024  }
 0xe9f   :  { %v1056_v59 = vsub.f32 1.0, %v1055_v62 }
 0xea0   :  { %1532 = vrcp.f32 %v1120_v7  ;;  %v1132_v27 = vand.u32 2147483648, %v1120_v7  ;;  %vm1126_vm10 = vweird.f32 %v1120_v7  ;;  %v1130_v28 = vand.u32 2147483647, %v1120_v7 }
 0xea1   :  { %v1057_v3 = vmul.f32 %v1529_v34, %v1056_v59 }
 0xea2   :  { %v1133_v9 = vor.u32 1.1754944e-38, %v1132_v27  ;;  %vm1131_vm12 = vcmp.eq.f32.partialorder %v1130_v28, 8.507059e+37 }
 0xea3   :  { %v1058_v39 = vadd.f32 %v1529_v34, %v1057_v3 }
 0xea5   :  { %v1062_v10 = vsel %vm1061_vm7, %v1529_v34, %v1058_v39 }
 0xea6   :  { %v1067_v13 = vsel %vm1064_vm8, %v1066_v11, %v1062_v10  ;;  %v1533_v16 = vpop.eup %1532 }
 0xea7   :  { %v1122_v17 = vmul.f32 %v1533_v16, %v1120_v7  ;;  %vm1127_vm9 = vweird.f32 %v1533_v16  ;;  %v1070_v8 = vmul.f32 %v1067_v13, %v1998_v19 }
 0xea8   :  { %vm1128_vm11 = vmor %vm1126_vm10, %vm1127_vm9 }
 0xea9   :  { %v1123_v20 = vsub.f32 1.0, %v1122_v17 }
 0xeab   :  { %v1124_v21 = vmul.f32 %v1533_v16, %v1123_v20 }
 0xead   :  { %v1125_v25 = vadd.f32 %v1533_v16, %v1124_v21 }
 0xeaf   :  { %v1129_v30 = vsel %vm1128_vm11, %v1533_v16, %v1125_v25 }
 0xeb0   :  { %v1134_v0 = vsel %vm1131_vm12, %v1133_v9, %v1129_v30 }
 0xeb1   :  { %v1137_v36 = vmul.f32 %v1134_v0, %v2003_v37 }
 0xee9   :  { %v1073_v12 = vpop.permute.xlu0 %1072 }
 0xeea   :  { %v1075_v52 = vmul.f32 %v1073_v12, %v1067_v13 }
 0xeec   :  { %1077 = vrot.lane.b32.xlu2 %v1075_v52, %s1693_s4 }
 0xf05   :  { %v1140_v32 = vpop.permute.xlu1 %1139 }
 0xf06   :  { %v1142_v5 = vmul.f32 %v1140_v32, %v1134_v0 }
 0xf08   :  { %1144 = vrot.lane.b32.xlu0 %v1142_v5, %s1693_s4 }
 0xf46   :  { %v1078_v26 = vpop.permute.xlu2 %1077 }
 0xf47   :  { %v2023_v23 = vadd.f32 %v1078_v26, %v1070_v8 }
 0xf49   :  { %1534 = vtanh.f32 %v2023_v23 }
 0xf4f   :  { %v1535_v24 = vpop.eup %1534 }
 0xf50   :  { %1083 = vrot.lane.b32.xlu1 %v1535_v24, %s1693_s4 }
 0xf7a   :  { %v1145_v33 = vpop.permute.xlu0 %1144 }
 0xf7b   :  { %v2028_v40 = vadd.f32 %v1145_v33, %v1137_v36 }
 0xf7d   :  { %1536 = vtanh.f32 %v2028_v40 }
 0xf83   :  { %v1537_v41 = vpop.eup %1536 }
 0xf84   :  { %1150 = vrot.lane.b32.xlu2 %v1537_v41, %s1693_s4 }
 0xfc2   :  { %v1084_v42 = vpop.permute.xlu1 %1083 }
 0xfc3   :  { %v1086_v19 = vmul.f32 %v1084_v42, %v1067_v13 }
 0xfc5   :  { %v1292_v43 = vadd.f32 %v1086_v19, %v1887_v15  ;;  %1155 = vst [vmem:[#allocation1] ss:$2 sm:$0xff] %v1086_v19 }
 0xfc7   :  { %1317 = vst [vmem:[#allocation1 + $0x20] ss:$2 sm:$0xff] %v1292_v43 }
 0xfcc   :  { %v1156_v44 = vld.sshfl [vmem:[#allocation1] sm:$0xff pattern:$0x75316420] }
 0xfcd   :  { %1157 = vrot.lane.b32.xlu1 %v1156_v44, %s1686_s30 }
 0xfde   :  { %v1151_v37 = vpop.permute.xlu2 %1150 }
 0xfdf   :  { %v1153_v45 = vmul.f32 %v1151_v37, %v1134_v0  ;;  %v1312_v0 = vld.sshfl [vmem:[#allocation1 + $0x30] sm:$0xff pattern:$0x75316420] }
 0xfe1   :  { %v1287_v18 = vadd.f32 %v1153_v45, %v1883_v48  ;;  %1222 = vst [vmem:[#allocation1] ss:$2 sm:$0xff] %v1153_v45 }
 0xfe3   :  { %1305 = vst [vmem:[#allocation1 + $0x10] ss:$2 sm:$0xff] %v1287_v18 }
 0xfe8   :  { %v1223_v49 = vld.sshfl [vmem:[#allocation1] sm:$0xff pattern:$0x75316420] }
 0xfe9   :  { %1224 = vrot.lane.b32.xlu0 %v1223_v49, %s1686_s30 }
 0xfea   :  { %v2040_v15 = vld.sshfl [vmem:[#allocation1 + $0x10] sm:$0xff pattern:$0x75316420] }
 0xfeb   :  { %1315 = vst [vmem:[#allocation1 + $0x10] ss:$2 sm:$0xff] %v1291_v55 }
 0xff2   :  { %v1316_v33 = vld.sshfl [vmem:[#allocation1 + $0x10] sm:$0xff pattern:$0x75316420] }
0x103f   :  { %v1158_v50 = vpop.permute.xlu1 %1157 }
0x1040   :  { %1409 = vmatmul.msk.f32.vlgmr.msrb.gmra.mxu2 %vm133_vm0, %v1158_v50 }
0x105b   :  { %v1225_v1 = vpop.permute.xlu0 %1224 }
0x105c   :  { %1411 = vmatmul.msk.f32.vlgmr.msrb.gmra.mxu3 %vm133_vm0, %v1225_v1 }
0x10c3   :  { %v1178_v51 = vpop.f32.mrf.mxu2 }
0x10c4   :  { %v1181_v48 = vadd.f32 %v1178_v51, %v224_v63 }
0x10c6   :  { %1538 = vtanh.f32 %v1181_v48  ;;  %v1410_v54 = vmul.f32 -1.442695, %v1181_v48 }
0x10cc   :  { %v1539_v53 = vpop.eup %1538 }
0x10cd   :  { %1204 = vrot.lane.b32.xlu0 %v1539_v53, %s1693_s4 }
0x10df   :  { %v1245_v2 = vpop.f32.mrf.mxu3 }
0x10e0   :  { %v1248_v56 = vadd.f32 %v1245_v2, %v1219_v31 }
0x10e2   :  { %1540 = vtanh.f32 %v1248_v56  ;;  %v1412_v22 = vmul.f32 -1.442695, %v1248_v56 }
0x10e3   :  { %1542 = vpow2.f32 %v1410_v54 }
0x10e4   :  { %1544 = vpow2.f32 %v1412_v22 }
0x10e8   :  { %v1541_v47 = vpop.eup %1540 }
0x10e9   :  { %1271 = vrot.lane.b32.xlu2 %v1541_v47, %s1693_s4  ;;  %v1543_v34 = vpop.eup %1542 }
0x10ea   :  { %v1185_v62 = vadd.f32 1.0, %v1543_v34  ;;  %v1545_v61 = vpop.eup %1544 }
0x10eb   :  { %v1252_v63 = vadd.f32 1.0, %v1545_v61 }
0x10ec   :  { %1546 = vrcp.f32 %v1185_v62  ;;  %v1197_v10 = vand.u32 2147483648, %v1185_v62  ;;  %vm1191_vm13 = vweird.f32 %v1185_v62  ;;  %v1195_v11 = vand.u32 2147483647, %v1185_v62 }
0x10ed   :  { %1548 = vrcp.f32 %v1252_v63  ;;  %v1264_v16 = vand.u32 2147483648, %v1252_v63  ;;  %vm1258_vm2 = vweird.f32 %v1252_v63  ;;  %v1262_v17 = vand.u32 2147483647, %v1252_v63 }
0x10ee   :  { %v1198_v52 = vor.u32 1.1754944e-38, %v1197_v10  ;;  %vm1196_vm1 = vcmp.eq.f32.partialorder %v1195_v11, 8.507059e+37 }
0x10ef   :  { %v1265_v28 = vor.u32 1.1754944e-38, %v1264_v16  ;;  %vm1263_vm4 = vcmp.eq.f32.partialorder %v1262_v17, 8.507059e+37 }
0x10f2   :  { %v1547_v58 = vpop.eup %1546 }
0x10f3   :  { %v1187_v59 = vmul.f32 %v1547_v58, %v1185_v62  ;;  %v1549_v3 = vpop.eup %1548  ;;  %vm1192_vm0 = vweird.f32 %v1547_v58 }
0x10f4   :  { %v1254_v46 = vmul.f32 %v1549_v3, %v1252_v63  ;;  %vm1193_vm14 = vmor %vm1191_vm13, %vm1192_vm0  ;;  %vm1259_vm15 = vweird.f32 %v1549_v3 }
0x10f5   :  { %v1188_v38 = vsub.f32 1.0, %v1187_v59  ;;  %vm1260_vm3 = vmor %vm1258_vm2, %vm1259_vm15 }
0x10f6   :  { %v1255_v6 = vsub.f32 1.0, %v1254_v46 }
0x10f7   :  { %v1189_v39 = vmul.f32 %v1547_v58, %v1188_v38 }
0x10f8   :  { %v1256_v7 = vmul.f32 %v1549_v3, %v1255_v6 }
0x10f9   :  { %v1190_v4 = vadd.f32 %v1547_v58, %v1189_v39 }
0x10fa   :  { %v1257_v13 = vadd.f32 %v1549_v3, %v1256_v7 }
0x10fb   :  { %v1194_v12 = vsel %vm1193_vm14, %v1547_v58, %v1190_v4 }
0x10fc   :  { %v1199_v20 = vsel %vm1196_vm1, %v1198_v52, %v1194_v12  ;;  %v1261_v27 = vsel %vm1260_vm3, %v1549_v3, %v1257_v13 }
0x10fd   :  { %v1266_v9 = vsel %vm1263_vm4, %v1265_v28, %v1261_v27  ;;  %v1202_v5 = vmul.f32 %v1199_v20, %v2023_v23 }
0x10fe   :  { %v1269_v41 = vmul.f32 %v1266_v9, %v2028_v40 }
0x113f   :  { %v1205_v21 = vpop.permute.xlu0 %1204 }
0x1140   :  { %v1207_v25 = vmul.f32 %v1205_v21, %v1199_v20 }
0x1142   :  { %1209 = vrot.lane.b32.xlu2 %v1207_v25, %s1693_s4 }
0x1143   :  { %v1272_v30 = vpop.permute.xlu2 %1271 }
0x1144   :  { %v1274_v32 = vmul.f32 %v1272_v30, %v1266_v9 }
0x1146   :  { %1276 = vrot.lane.b32.xlu1 %v1274_v32, %s1693_s4 }
0x114a   :  { %1327 = vrot.lane.b32.xlu2 %v1312_v0, %s1686_s30 }
0x119c   :  { %v1210_v8 = vpop.permute.xlu2 %1209 }
0x119d   :  { %v1212_v26 = vadd.f32 %v1210_v8, %v1202_v5 }
0x119f   :  { %1550 = vtanh.f32 %v1212_v26 }
0x11a4   :  { %v1328_v24 = vpop.permute.xlu2 %1327 }
0x11a5   :  { %v1551_v36 = vpop.eup %1550  ;;  %1349 = vst.msk [vmem:[#allocation10 + $0xc] sm:$0xf] %vm1345_vm5, %v1328_v24 }
0x11a6   :  { %1215 = vrot.lane.b32.xlu1 %v1551_v36, %s1693_s4 }
0x11ae   :  { %1325 = vrot.lane.b32.xlu1 %v2033_v14, %s1686_s30 }
0x11b6   :  { %1331 = vrot.lane.b32.xlu1 %v1316_v33, %s1686_s30 }
0x11b8   :  { %v1277_v42 = vpop.permute.xlu1 %1276 }
0x11b9   :  { %v1279_v23 = vadd.f32 %v1277_v42, %v1269_v41 }
0x11bb   :  { %1552 = vtanh.f32 %v1279_v23 }
0x11c1   :  { %v1553_v19 = vpop.eup %1552 }
0x11c2   :  { %1282 = vrot.lane.b32.xlu0 %v1553_v19, %s1693_s4 }
0x11ca   :  { %1323 = vrot.lane.b32.xlu0 %v2040_v15, %s1686_s30  ;;  %v1290_v15 = vadd.f32 %v1982_v29, %v1959_v35 }
0x1218   :  { %v1216_v43 = vpop.permute.xlu1 %1215 }
0x1219   :  { %v1218_v44 = vmul.f32 %v1216_v43, %v1199_v20 }
0x121b   :  { %v1293_v37 = vadd.f32 %v1218_v44, %v1851_v60  ;;  %v1318_v60 = vld.sshfl [vmem:[#allocation1 + $0x20] sm:$0xff pattern:$0x75316420] }
0x121d   :  { %1319 = vst [vmem:[#allocation1 + $0x30] ss:$2 sm:$0xff] %v1293_v37 }
0x1220   :  { %v1326_v14 = vpop.permute.xlu1 %1325 }
0x1221   :  { %1348 = vst.msk [vmem:[#allocation10 + $0x8] sm:$0xf] %vm1345_vm5, %v1326_v14 }
0x1224   :  { %v1320_v51 = vld.sshfl [vmem:[#allocation1 + $0x30] sm:$0xff pattern:$0x75316420] }
0x1228   :  { %v1332_v45 = vpop.permute.xlu1 %1331 }
0x1229   :  { %1351 = vst.msk [vmem:[#allocation10 + $0x14] sm:$0xf] %vm1345_vm5, %v1332_v45 }
0x1234   :  { %v1283_v40 = vpop.permute.xlu0 %1282 }
0x1235   :  { %v1285_v18 = vmul.f32 %v1283_v40, %v1266_v9 }
0x1237   :  { %v1286_v49 = vadd.f32 %v1285_v18, %v1847_v57 }
0x1239   :  { %1302 = vst [vmem:[#allocation1] ss:$2 sm:$0xff] %v1286_v49 }
0x123c   :  { %v1324_v55 = vpop.permute.xlu0 %1323 }
0x123d   :  { %1347 = vst.msk [vmem:[#allocation10 + $0x4] sm:$0xf] %vm1345_vm5, %v1324_v55 }
0x1240   :  { %v1303_v50 = vld.sshfl [vmem:[#allocation1] sm:$0xff pattern:$0x75316420] }
0x1241   :  { %1321 = vrot.lane.b32.xlu2 %v1303_v50, %s1686_s30  ;;  %1313 = vst [vmem:[#allocation1] ss:$2 sm:$0xff] %v1290_v15 }
0x1248   :  { %v1314_v1 = vld.sshfl [vmem:[#allocation1] sm:$0xff pattern:$0x75316420] }
0x1249   :  { %1333 = vrot.lane.b32.xlu2 %v1318_v60, %s1686_s30  ;;  %1329 = vrot.lane.b32.xlu0 %v1314_v1, %s1686_s30 }
0x1251   :  { %1335 = vrot.lane.b32.xlu0 %v1320_v51, %s1686_s30 }
0x129b   :  { %v1322_v57 = vpop.permute.xlu2 %1321 }
0x129c   :  { %1346 = vst.msk [vmem:[#allocation10] sm:$0xf] %vm1345_vm5, %v1322_v57 }
0x12a3   :  { %v1334_v48 = vpop.permute.xlu2 %1333 }
0x12a4   :  { %1352 = vst.msk [vmem:[#allocation10 + $0x18] sm:$0xf] %vm1345_vm5, %v1334_v48 }
0x12bb   :  { %v1330_v35 = vpop.permute.xlu0 %1329 }
0x12bc   :  { %1350 = vst.msk [vmem:[#allocation10 + $0x10] sm:$0xf] %vm1345_vm5, %v1330_v35 }
0x12c3   :  { %v1336_v29 = vpop.permute.xlu0 %1335 }
0x12c4   :  { %1353 = vst.msk [vmem:[#allocation10 + $0x1c] sm:$0xf] %vm1345_vm5, %v1336_v29 }
0x12c5   :  { %1366 = dma.vmem_to_hbm [thread:$0]  %s1359_s18, 512, %s1361_s21, [#allocation4], %s1686_s30, %s1686_s30, %s1687_s6  }
0x12c6   :  { %1680 = dma.done.wait [#allocation4], 512  }
0x12c7   :  { %1681 = vsyncadd [#allocation4], 4294966784 }
0x12c8   :  { %1371 = vsyncpa [#allocation3], 1 }
0x12c9   :  { %1372 = vsyncpa [#allocation6], 1 }
0x12ca   :  { %1373 = vsyncpa [#allocation9], 1 }
0x12cb   :  { %1374 = vsyncpa [#allocation4], 1 }

</bundles_post_ra>
